<compile_context>
chip_gen: v7x
topology: tpu7x:2x2x1
jax: 0.10.0
libtpu: 0.0.40
codegen_flags: <defaults>
</compile_context>

<pallas_src>
import math
import jax
import jax.numpy as jnp
from jax import lax
from jax.experimental import pallas as pl
from jax.experimental.pallas import tpu as pltpu

# --- small synthetic hyper-params (real ViT-H-14 text: D=1024, H=16, 24 layers, S=77) ---
S = 8          # max_length analogue
D = 32         # transformer width
H = 4          # attention heads
DH = D // H    # head dim
VOCAB = 100
N_LAYERS = 2
EPS = 1e-5


# ----------------------------- in-kernel math helpers -----------------------------
def _layernorm(x, g, b):
    mu = jnp.mean(x, axis=-1, keepdims=True)
    var = jnp.mean((x - mu) ** 2, axis=-1, keepdims=True)
    return (x - mu) * lax.rsqrt(var + EPS) * g + b


def _erf(x):
    # Abramowitz & Stegun 7.1.26 rational approx, |err| < 1.5e-7 (float32-level exact).
    # TODO(synk): exact lax.erf if/when guaranteed to lower in Mosaic.
    a1, a2, a3, a4, a5 = 0.254829592, -0.284496736, 1.421413741, -1.453152027, 1.061405429
    p = 0.3275911
    ax = jnp.abs(x)
    t = 1.0 / (1.0 + p * ax)
    poly = ((((a5 * t + a4) * t + a3) * t + a2) * t + a1) * t
    y = 1.0 - poly * jnp.exp(-ax * ax)
    return jnp.where(x >= 0, y, -y)


def _gelu_exact(x):
    # nn.GELU (erf form), matching open_clip's act_layer
    return 0.5 * x * (1.0 + _erf(x * (1.0 / math.sqrt(2.0))))


# ----------------------------- fused transformer-stack kernel -----------------------------
# ps_ref rows: 0 g1, 1 b1, 2 g2, 3 b2, 4 bo, 5 bproj, 6 bq*scale, 7 bk, 8 bv
def text_stack_kernel(mask_ref, x_ref, wqkv_ref, wo_ref, wfc_ref, wproj_ref,
                      ps_ref, bfc_ref, lnf_ref, o_ref, xacc_ref):
    l = pl.program_id(1)
    n_layers = pl.num_programs(1)
    TB = x_ref.shape[0]             # batch rows handled per grid step (static)
    N = TB * S

    # init the VMEM-resident residual stream for this batch tile
    @pl.when(l == 0)
    def _():
        xacc_ref[...] = x_ref[...].reshape(N, D)

    x = xacc_ref[...]                 # (N, D)  f32 residual stream (flattened batch*seq)
    ps = ps_ref[0]                    # (9, D)  f32 packed small params
    mask = mask_ref[...]              # (S, S)  f32 additive causal mask (0 / -1e30)

    # --- attention branch: x + out_proj(softmax(q k^T + mask) v) ---
    h = _layernorm(x, ps[0:1], ps[1:2])
    qkv = jnp.dot(h.astype(jnp.bfloat16), wqkv_ref[0],
                  preferred_element_type=jnp.float32)                      # (N, 3D)
    q = qkv[:, 0 * D:1 * D] + ps[6:7]        # 1/sqrt(DH) already folded into wq/bq
    k = qkv[:, 1 * D:2 * D] + ps[7:8]
    v = qkv[:, 2 * D:3 * D] + ps[8:9]

    # attention einsums are cheap relative to the dense matmuls; do them per batch row
    # with the proven 3-D head-batched layout (avoids 4-D relayouts in Mosaic).
    rows = []
    for t in range(TB):
        sl = slice(t * S, (t + 1) * S)
        qh = jnp.transpose(q[sl].reshape(S, H, DH), (1, 0, 2))             # (H, S, DH)
        kh = jnp.transpose(k[sl].reshape(S, H, DH), (1, 0, 2))
        vh = jnp.transpose(v[sl].reshape(S, H, DH), (1, 0, 2))
        sc = jnp.einsum('hqd,hkd->hqk',
                        qh.astype(jnp.bfloat16), kh.astype(jnp.bfloat16),
                        preferred_element_type=jnp.float32)                # (H, S, S)
        sc = sc + mask[None, :, :]
        sc = sc - jnp.max(sc, axis=-1, keepdims=True)
        e = jnp.exp(sc)
        p = e * pl.reciprocal(jnp.sum(e, axis=-1, keepdims=True), approx=True)
        ctx = jnp.einsum('hqk,hkd->hqd',
                         p.astype(jnp.bfloat16), vh.astype(jnp.bfloat16),
                         preferred_element_type=jnp.float32)               # (H, S, DH)
        rows.append(jnp.transpose(ctx, (1, 0, 2)).reshape(S, D))
    attn = rows[0] if TB == 1 else jnp.concatenate(rows, axis=0)           # (N, D)
    attn = jnp.dot(attn.astype(jnp.bfloat16), wo_ref[0],
                   preferred_element_type=jnp.float32) + ps[4:5]
    x = x + attn

    # --- MLP branch: x + proj(gelu(fc(ln_2(x)))) ---
    h2 = _layernorm(x, ps[2:3], ps[3:4])
    m = jnp.dot(h2.astype(jnp.bfloat16), wfc_ref[0],
                preferred_element_type=jnp.float32) + bfc_ref[0]           # (N, 4D)
    m = _gelu_exact(m)
    m = jnp.dot(m.astype(jnp.bfloat16), wproj_ref[0],
                preferred_element_type=jnp.float32) + ps[5:6]
    x = x + m
    xacc_ref[...] = x

    # fold ln_final into the last layer's grid step
    @pl.when(l == n_layers - 1)
    def _():
        lnf = lnf_ref[...]                                                 # (2, D)
        o_ref[...] = _layernorm(x, lnf[0:1], lnf[1:2]).reshape(TB, S, D).astype(o_ref.dtype)


# ----------------------------- pallas_call wrapper -----------------------------
def run_text_transformer(x, mask, wqkv, wo, wfc, wproj, ps, bfc, lnf, *, tb=None):
    B = x.shape[0]
    L = wqkv.shape[0]
    if tb is None:
        tb = B              # whole batch per tile -> each layer's weights DMA'd exactly once
        # TODO(synk): on v7x set tb = ceil(B/2) so the two TensorCores each stream the stack once.
    assert B % tb == 0
    return pl.pallas_call(
        text_stack_kernel,
        out_shape=jax.ShapeDtypeStruct(x.shape, jnp.float32),
        grid_spec=pltpu.PrefetchScalarGridSpec(
            num_scalar_prefetch=0,
            grid=(B // tb, L),                            # L last => x stays VMEM-resident per tile
            in_specs=[
                pl.BlockSpec((S, S), lambda b, l: (0, 0)),             # additive causal mask
                pl.BlockSpec((tb, S, D), lambda b, l: (b, 0, 0)),      # embedded tokens
                pl.BlockSpec((1, D, 3 * D), lambda b, l: (l, 0, 0)),   # fused qkv weight (bf16)
                pl.BlockSpec((1, D, D), lambda b, l: (l, 0, 0)),       # out-proj weight (bf16)
                pl.BlockSpec((1, D, 4 * D), lambda b, l: (l, 0, 0)),   # mlp fc weight   (bf16)
                pl.BlockSpec((1, 4 * D, D), lambda b, l: (l, 0, 0)),   # mlp proj weight (bf16)
                pl.BlockSpec((1, 9, D), lambda b, l: (l, 0, 0)),       # packed LN/bias params
                pl.BlockSpec((1, 1, 4 * D), lambda b, l: (l, 0, 0)),   # fc bias
                pl.BlockSpec((2, D), lambda b, l: (0, 0)),             # ln_final gain/bias
            ],
            out_specs=pl.BlockSpec((tb, S, D), lambda b, l: (b, 0, 0)),
            scratch_shapes=[pltpu.VMEM((tb * S, D), jnp.float32)],     # residual-stream accumulator
        ),
        compiler_params=pltpu.CompilerParams(
            dimension_semantics=("parallel", "arbitrary"),
            # TODO(synk): re-derive per chip at real ViT-H size (bf16 weights ~25 MiB/layer;
            # on v7x reduce buffering / split attn+mlp phases so double-buffered weights fit 64 MiB).
            vmem_limit_bytes=48 * 1024 * 1024,
        ),
    )(mask, x, wqkv, wo, wfc, wproj, ps, bfc, lnf)


# ----------------------------- parameter packing -----------------------------
def _additive_causal_mask():
    row = jnp.arange(S)[:, None]
    col = jnp.arange(S)[None, :]
    return jnp.where(col <= row, 0.0, -1e30).astype(jnp.float32)


def pack_stack_params(blocks):
    """Stack per-layer params with a leading L axis; fuse qkv; fold 1/sqrt(DH) into wq/bq."""
    scale = 1.0 / math.sqrt(DH)
    wqkv = jnp.stack([jnp.concatenate([b["wq"] * scale, b["wk"], b["wv"]], axis=1)
                      for b in blocks]).astype(jnp.bfloat16)                    # (L, D, 3D)
    wo = jnp.stack([b["wo"] for b in blocks]).astype(jnp.bfloat16)              # (L, D, D)
    wfc = jnp.stack([b["wfc"] for b in blocks]).astype(jnp.bfloat16)            # (L, D, 4D)
    wproj = jnp.stack([b["wproj"] for b in blocks]).astype(jnp.bfloat16)        # (L, 4D, D)
    ps = jnp.stack([jnp.stack([b["g1"], b["b1"], b["g2"], b["b2"],
                               b["bo"], b["bproj"],
                               b["bq"] * scale, b["bk"], b["bv"]], axis=0)
                    for b in blocks]).astype(jnp.float32)                       # (L, 9, D)
    bfc = jnp.stack([b["bfc"].reshape(1, 4 * D) for b in blocks]
                    ).astype(jnp.float32)                                       # (L, 1, 4D)
    return wqkv, wo, wfc, wproj, ps, bfc


# ----------------------------- parameter init (deterministic, synthetic) -----------------------------
def init_params(key):
    k_emb, k_pos, *k_blocks = jax.random.split(key, 2 + N_LAYERS)
    tok_emb = jax.random.normal(k_emb, (VOCAB, D), jnp.float32) * 0.02
    pos_emb = jax.random.normal(k_pos, (S, D), jnp.float32) * 0.01

    def nrm(k, shape, scl):
        return jax.random.normal(k, shape, jnp.float32) * scl

    blocks = []
    for kb in k_blocks:
        ks = jax.random.split(kb, 12)
        blocks.append(dict(
            g1=jnp.ones((D,), jnp.float32), b1=jnp.zeros((D,), jnp.float32),
            wq=nrm(ks[0], (D, D), 0.05), bq=nrm(ks[1], (D,), 0.01),
            wk=nrm(ks[2], (D, D), 0.05), bk=nrm(ks[3], (D,), 0.01),
            wv=nrm(ks[4], (D, D), 0.05), bv=nrm(ks[5], (D,), 0.01),
            wo=nrm(ks[6], (D, D), 0.05), bo=nrm(ks[7], (D,), 0.01),
            g2=jnp.ones((D,), jnp.float32), b2=jnp.zeros((D,), jnp.float32),
            wfc=nrm(ks[8], (D, 4 * D), 0.05), bfc=nrm(ks[9], (4 * D,), 0.01),
            wproj=nrm(ks[10], (4 * D, D), 0.05), bproj=nrm(ks[11], (D,), 0.01),
        ))
    ln_f = dict(g=jnp.ones((D,), jnp.float32), b=jnp.zeros((D,), jnp.float32))
    return tok_emb, pos_emb, blocks, ln_f


# ----------------------------- forward (encode_with_transformer) -----------------------------
def frozen_openclip_embed(tokens, tok_emb, pos_emb, blocks, ln_f, layer="last"):
    assert layer in ("last", "penultimate")
    layer_idx = 0 if layer == "last" else 1
    active = blocks[: len(blocks) - layer_idx]       # text_transformer_forward break semantics
    # token_embedding(text) + positional_embedding   (gather is glue, plain JAX)
    x = (tok_emb[tokens] + pos_emb[None, :, :]).astype(jnp.float32)     # [B, S, D]
    wqkv, wo, wfc, wproj, ps, bfc = pack_stack_params(active)
    lnf = jnp.stack([ln_f["g"], ln_f["b"]], axis=0).astype(jnp.float32)  # (2, D)
    mask = _additive_causal_mask()
    return run_text_transformer(x, mask, wqkv, wo, wfc, wproj, ps, bfc, lnf)   # [B, S, D]


# ----------------------------- pure-JAX reference (f32) for sanity check -----------------------------
def _ref_forward(tokens, tok_emb, pos_emb, blocks, ln_f, layer_idx):
    B = tokens.shape[0]
    x = tok_emb[tokens] + pos_emb[None]
    scale = 1.0 / math.sqrt(DH)
    mask = _additive_causal_mask()

    def ln(x, g, b):
        mu = x.mean(-1, keepdims=True)
        var = ((x - mu) ** 2).mean(-1, keepdims=True)
        return (x - mu) / jnp.sqrt(var + EPS) * g + b

    for blk in blocks[: len(blocks) - layer_idx]:
        h = ln(x, blk["g1"], blk["b1"])
        q = (h @ blk["wq"] + blk["bq"]) * scale
        k = h @ blk["wk"] + blk["bk"]
        v = h @ blk["wv"] + blk["bv"]
        q = q.reshape(B, S, H, DH).transpose(0, 2, 1, 3)
        k = k.reshape(B, S, H, DH).transpose(0, 2, 1, 3)
        v = v.reshape(B, S, H, DH).transpose(0, 2, 1, 3)
        sc = jnp.einsum('bhqd,bhkd->bhqk', q, k) + mask
        p = jax.nn.softmax(sc, axis=-1)
        ctx = jnp.einsum('bhqk,bhkd->bhqd', p, v).transpose(0, 2, 1, 3).reshape(B, S, D)
        x = x + ctx @ blk["wo"] + blk["bo"]
        h2 = ln(x, blk["g2"], blk["b2"])
        m = jax.nn.gelu(h2 @ blk["wfc"] + blk["bfc"], approximate=False)
        x = x + m @ blk["wproj"] + blk["bproj"]
    return ln(x, ln_f["g"], ln_f["b"])


if __name__ == "__main__":
    key = jax.random.PRNGKey(0)
    k_tok, k_par = jax.random.split(key)
    # "tokens" stand in for open_clip.tokenize(text) output (int token ids)
    tokens = jax.random.randint(k_tok, (2, S), 0, VOCAB, dtype=jnp.int32)
    tok_emb, pos_emb, blocks, ln_f = init_params(k_par)

    z = frozen_openclip_embed(tokens, tok_emb, pos_emb, blocks, ln_f, layer="last")
    z = jax.block_until_ready(z)
    assert z.shape == (2, S, D) and z.dtype == jnp.float32
    assert bool(jnp.all(jnp.isfinite(z)))

    # loose sanity check vs f32 reference (kernel matmuls run in bf16)
    z_ref = _ref_forward(tokens, tok_emb, pos_emb, blocks, ln_f, layer_idx=0)
    assert float(jnp.max(jnp.abs(z - z_ref))) < 0.25

    print("KERNEL_OK")
</pallas_src>

<mosaic_0001>
module attributes {stable_mosaic.version = 11 : i64} {
  func.func @text_stack_kernel(%arg0: i32, %arg1: i32, %arg2: memref<8x8xf32, #tpu.memory_space<vmem>>, %arg3: memref<2x8x32xf32, #tpu.memory_space<vmem>>, %arg4: memref<1x32x96xbf16, #tpu.memory_space<vmem>>, %arg5: memref<1x32x32xbf16, #tpu.memory_space<vmem>>, %arg6: memref<1x32x128xbf16, #tpu.memory_space<vmem>>, %arg7: memref<1x128x32xbf16, #tpu.memory_space<vmem>>, %arg8: memref<1x9x32xf32, #tpu.memory_space<vmem>>, %arg9: memref<1x1x128xf32, #tpu.memory_space<vmem>>, %arg10: memref<2x32xf32, #tpu.memory_space<vmem>>, %arg11: memref<2x8x32xf32, #tpu.memory_space<vmem>>, %arg12: memref<16x32xf32, #tpu.memory_space<vmem>>) attributes {dimension_semantics = [#tpu.dimension_semantics<parallel>, #tpu.dimension_semantics<arbitrary>], iteration_bounds = array<i64: 1, 2>, scalar_prefetch = 0 : i64, scratch_operands = 1 : i64, tpu.core_type = #tpu.core_type<tc>, window_params = [{pipeline_mode = #tpu.pipeline_mode<synchronous>, transform_indices = @transform_0, window_bounds = array<i64: 8, 8>}, {transform_indices = @transform_1, window_bounds = array<i64: 2, 8, 32>}, {transform_indices = @transform_2, window_bounds = array<i64: 1, 32, 96>}, {transform_indices = @transform_3, window_bounds = array<i64: 1, 32, 32>}, {transform_indices = @transform_4, window_bounds = array<i64: 1, 32, 128>}, {transform_indices = @transform_5, window_bounds = array<i64: 1, 128, 32>}, {transform_indices = @transform_6, window_bounds = array<i64: 1, 9, 32>}, {transform_indices = @transform_7, window_bounds = array<i64: 1, 1, 128>}, {pipeline_mode = #tpu.pipeline_mode<synchronous>, transform_indices = @transform_8, window_bounds = array<i64: 2, 32>}, {transform_indices = @transform_9, window_bounds = array<i64: 2, 8, 32>}]} {
    %c0_i32 = arith.constant 0 : i32
    %0 = arith.cmpi eq, %arg1, %c0_i32 : i32
    %1 = arith.extui %0 : i1 to i32
    %c0_i32_0 = arith.constant 0 : i32
    %2 = arith.cmpi ne, %1, %c0_i32_0 : i32
    scf.if %2 {
      %c0_61 = arith.constant 0 : index
      %c0_62 = arith.constant 0 : index
      %c0_63 = arith.constant 0 : index
      %200 = vector.load %arg3[%c0_61, %c0_62, %c0_63] : memref<2x8x32xf32, #tpu.memory_space<vmem>>, vector<2x8x32xf32>
      %201 = vector.shape_cast %200 : vector<2x8x32xf32> to vector<16x32xf32>
      %c0_64 = arith.constant 0 : index
      %c0_65 = arith.constant 0 : index
      %202 = vector.load %arg12[%c0_64, %c0_65] : memref<16x32xf32, #tpu.memory_space<vmem>>, vector<16x32xf32>
      tpu.vector_store %arg12[%c0_64, %c0_65], %201 {strides = array<i32>} : memref<16x32xf32, #tpu.memory_space<vmem>>, vector<16x32xf32>,
    } else {
    }
    %c0 = arith.constant 0 : index
    %c0_1 = arith.constant 0 : index
    %3 = vector.load %arg12[%c0, %c0_1] : memref<16x32xf32, #tpu.memory_space<vmem>>, vector<16x32xf32>
    %c0_2 = arith.constant 0 : index
    %c0_3 = arith.constant 0 : index
    %c0_4 = arith.constant 0 : index
    %4 = vector.load %arg8[%c0_2, %c0_3, %c0_4] : memref<1x9x32xf32, #tpu.memory_space<vmem>>, vector<1x9x32xf32>
    %5 = vector.shape_cast %4 : vector<1x9x32xf32> to vector<9x32xf32>
    %c0_5 = arith.constant 0 : index
    %c0_6 = arith.constant 0 : index
    %6 = vector.load %arg2[%c0_5, %c0_6] : memref<8x8xf32, #tpu.memory_space<vmem>>, vector<8x8xf32>
    %7 = vector.extract_strided_slice %5 {offsets = [0, 0], sizes = [1, 32], strides = [1, 1]} : vector<9x32xf32> to vector<1x32xf32>
    %8 = vector.extract_strided_slice %5 {offsets = [1, 0], sizes = [1, 32], strides = [1, 1]} : vector<9x32xf32> to vector<1x32xf32>
    %cst = arith.constant dense<0.000000e+00> : vector<16xf32>
    %9 = vector.multi_reduction <add>, %3, %cst [1] : vector<16x32xf32> to vector<16xf32>
    %10 = vector.shape_cast %9 : vector<16xf32> to vector<16x1xf32>
    %cst_7 = arith.constant 3.200000e+01 : f32
    %11 = vector.broadcast %cst_7 : f32 to vector<16x1xf32>
    %12 = arith.divf %10, %11 : vector<16x1xf32>
    %13 = vector.broadcast %12 : vector<16x1xf32> to vector<16x32xf32>
    %14 = arith.subf %3, %13 : vector<16x32xf32>
    %15 = arith.mulf %14, %14 : vector<16x32xf32>
    %cst_8 = arith.constant dense<0.000000e+00> : vector<16xf32>
    %16 = vector.multi_reduction <add>, %15, %cst_8 [1] : vector<16x32xf32> to vector<16xf32>
    %17 = vector.shape_cast %16 : vector<16xf32> to vector<16x1xf32>
    %cst_9 = arith.constant 3.200000e+01 : f32
    %18 = vector.broadcast %cst_9 : f32 to vector<16x1xf32>
    %19 = arith.divf %17, %18 : vector<16x1xf32>
    %20 = vector.broadcast %12 : vector<16x1xf32> to vector<16x32xf32>
    %21 = arith.subf %3, %20 : vector<16x32xf32>
    %cst_10 = arith.constant 9.99999974E-6 : f32
    %22 = vector.broadcast %cst_10 : f32 to vector<16x1xf32>
    %23 = arith.addf %19, %22 : vector<16x1xf32>
    %24 = math.rsqrt %23 : vector<16x1xf32>
    %25 = vector.broadcast %24 : vector<16x1xf32> to vector<16x32xf32>
    %26 = arith.mulf %21, %25 : vector<16x32xf32>
    %27 = vector.broadcast %7 : vector<1x32xf32> to vector<16x32xf32>
    %28 = arith.mulf %26, %27 : vector<16x32xf32>
    %29 = vector.broadcast %8 : vector<1x32xf32> to vector<16x32xf32>
    %30 = arith.addf %28, %29 : vector<16x32xf32>
    %31 = arith.truncf %30 : vector<16x32xf32> to vector<16x32xbf16>
    %c0_11 = arith.constant 0 : index
    %c0_12 = arith.constant 0 : index
    %c0_13 = arith.constant 0 : index
    %32 = vector.load %arg4[%c0_11, %c0_12, %c0_13] : memref<1x32x96xbf16, #tpu.memory_space<vmem>>, vector<1x32x96xbf16>
    %33 = vector.shape_cast %32 : vector<1x32x96xbf16> to vector<32x96xbf16>
    %cst_14 = arith.constant dense<0.000000e+00> : vector<16x96xf32>
    %34 = tpu.matmul %31, %33, %cst_14 {dimension_numbers = #tpu.dot_dimension_numbers<[1], [0], [0], [1], [0, 0, 1, 1], [], []>} : vector<16x32xbf16>, vector<32x96xbf16>, vector<16x96xf32> -> vector<16x96xf32>
    %35 = vector.extract_strided_slice %34 {offsets = [0, 0], sizes = [16, 32], strides = [1, 1]} : vector<16x96xf32> to vector<16x32xf32>
    %36 = vector.extract_strided_slice %5 {offsets = [6, 0], sizes = [1, 32], strides = [1, 1]} : vector<9x32xf32> to vector<1x32xf32>
    %37 = vector.broadcast %36 : vector<1x32xf32> to vector<16x32xf32>
    %38 = arith.addf %35, %37 : vector<16x32xf32>
    %39 = vector.extract_strided_slice %34 {offsets = [0, 32], sizes = [16, 32], strides = [1, 1]} : vector<16x96xf32> to vector<16x32xf32>
    %40 = vector.extract_strided_slice %5 {offsets = [7, 0], sizes = [1, 32], strides = [1, 1]} : vector<9x32xf32> to vector<1x32xf32>
    %41 = vector.broadcast %40 : vector<1x32xf32> to vector<16x32xf32>
    %42 = arith.addf %39, %41 : vector<16x32xf32>
    %43 = vector.extract_strided_slice %34 {offsets = [0, 64], sizes = [16, 32], strides = [1, 1]} : vector<16x96xf32> to vector<16x32xf32>
    %44 = vector.extract_strided_slice %5 {offsets = [8, 0], sizes = [1, 32], strides = [1, 1]} : vector<9x32xf32> to vector<1x32xf32>
    %45 = vector.broadcast %44 : vector<1x32xf32> to vector<16x32xf32>
    %46 = arith.addf %43, %45 : vector<16x32xf32>
    %47 = vector.extract_strided_slice %38 {offsets = [0, 0], sizes = [8, 32], strides = [1, 1]} : vector<16x32xf32> to vector<8x32xf32>
    %48 = vector.shape_cast %47 : vector<8x32xf32> to vector<8x4x8xf32>
    %49 = tpu.transpose %48, [1, 0, 2] : vector<8x4x8xf32> -> vector<4x8x8xf32>
    %50 = vector.extract_strided_slice %42 {offsets = [0, 0], sizes = [8, 32], strides = [1, 1]} : vector<16x32xf32> to vector<8x32xf32>
    %51 = vector.shape_cast %50 : vector<8x32xf32> to vector<8x4x8xf32>
    %52 = tpu.transpose %51, [1, 0, 2] : vector<8x4x8xf32> -> vector<4x8x8xf32>
    %53 = vector.extract_strided_slice %46 {offsets = [0, 0], sizes = [8, 32], strides = [1, 1]} : vector<16x32xf32> to vector<8x32xf32>
    %54 = vector.shape_cast %53 : vector<8x32xf32> to vector<8x4x8xf32>
    %55 = tpu.transpose %54, [1, 0, 2] : vector<8x4x8xf32> -> vector<4x8x8xf32>
    %56 = arith.truncf %49 : vector<4x8x8xf32> to vector<4x8x8xbf16>
    %57 = arith.truncf %52 : vector<4x8x8xf32> to vector<4x8x8xbf16>
    "tpu.trace_start"() <{level = 10 : i32, message = "hqd,hkd->hqk"}> : () -> ()
    %cst_15 = arith.constant dense<0.000000e+00> : vector<4x8x8xf32>
    %58 = tpu.matmul %56, %57, %cst_15 {dimension_numbers = #tpu.dot_dimension_numbers<[2], [2], [1], [1], [0, 0, 0, 1, 1, 1], [0], [0]>} : vector<4x8x8xbf16>, vector<4x8x8xbf16>, vector<4x8x8xf32> -> vector<4x8x8xf32>
    "tpu.trace_stop"() : () -> ()
    %59 = vector.shape_cast %6 : vector<8x8xf32> to vector<1x8x8xf32>
    %60 = vector.broadcast %59 : vector<1x8x8xf32> to vector<4x8x8xf32>
    %61 = arith.addf %58, %60 : vector<4x8x8xf32>
    %cst_16 = arith.constant dense<0xFF800000> : vector<4x8xf32>
    %62 = vector.multi_reduction <maximumf>, %61, %cst_16 [2] : vector<4x8x8xf32> to vector<4x8xf32>
    %63 = vector.shape_cast %62 : vector<4x8xf32> to vector<4x8x1xf32>
    %64 = vector.broadcast %63 : vector<4x8x1xf32> to vector<4x8x8xf32>
    %65 = arith.subf %61, %64 : vector<4x8x8xf32>
    %66 = math.exp %65 : vector<4x8x8xf32>
    %cst_17 = arith.constant dense<0.000000e+00> : vector<4x8xf32>
    %67 = vector.multi_reduction <add>, %66, %cst_17 [2] : vector<4x8x8xf32> to vector<4x8xf32>
    %68 = vector.shape_cast %67 : vector<4x8xf32> to vector<4x8x1xf32>
    %69 = tpu.reciprocal %68 {approx = true} : vector<4x8x1xf32> -> vector<4x8x1xf32>
    %70 = vector.broadcast %69 : vector<4x8x1xf32> to vector<4x8x8xf32>
    %71 = arith.mulf %66, %70 : vector<4x8x8xf32>
    %72 = arith.truncf %71 : vector<4x8x8xf32> to vector<4x8x8xbf16>
    %73 = arith.truncf %55 : vector<4x8x8xf32> to vector<4x8x8xbf16>
    "tpu.trace_start"() <{level = 10 : i32, message = "hqk,hkd->hqd"}> : () -> ()
    %cst_18 = arith.constant dense<0.000000e+00> : vector<4x8x8xf32>
    %74 = tpu.matmul %72, %73, %cst_18 {dimension_numbers = #tpu.dot_dimension_numbers<[2], [1], [1], [2], [0, 0, 0, 1, 1, 2], [0], [0]>} : vector<4x8x8xbf16>, vector<4x8x8xbf16>, vector<4x8x8xf32> -> vector<4x8x8xf32>
    "tpu.trace_stop"() : () -> ()
    %75 = tpu.transpose %74, [1, 0, 2] : vector<4x8x8xf32> -> vector<8x4x8xf32>
    %76 = vector.shape_cast %75 : vector<8x4x8xf32> to vector<8x32xf32>
    %77 = vector.extract_strided_slice %38 {offsets = [8, 0], sizes = [8, 32], strides = [1, 1]} : vector<16x32xf32> to vector<8x32xf32>
    %78 = vector.shape_cast %77 : vector<8x32xf32> to vector<8x4x8xf32>
    %79 = tpu.transpose %78, [1, 0, 2] : vector<8x4x8xf32> -> vector<4x8x8xf32>
    %80 = vector.extract_strided_slice %42 {offsets = [8, 0], sizes = [8, 32], strides = [1, 1]} : vector<16x32xf32> to vector<8x32xf32>
    %81 = vector.shape_cast %80 : vector<8x32xf32> to vector<8x4x8xf32>
    %82 = tpu.transpose %81, [1, 0, 2] : vector<8x4x8xf32> -> vector<4x8x8xf32>
    %83 = vector.extract_strided_slice %46 {offsets = [8, 0], sizes = [8, 32], strides = [1, 1]} : vector<16x32xf32> to vector<8x32xf32>
    %84 = vector.shape_cast %83 : vector<8x32xf32> to vector<8x4x8xf32>
    %85 = tpu.transpose %84, [1, 0, 2] : vector<8x4x8xf32> -> vector<4x8x8xf32>
    %86 = arith.truncf %79 : vector<4x8x8xf32> to vector<4x8x8xbf16>
    %87 = arith.truncf %82 : vector<4x8x8xf32> to vector<4x8x8xbf16>
    "tpu.trace_start"() <{level = 10 : i32, message = "hqd,hkd->hqk"}> : () -> ()
    %cst_19 = arith.constant dense<0.000000e+00> : vector<4x8x8xf32>
    %88 = tpu.matmul %86, %87, %cst_19 {dimension_numbers = #tpu.dot_dimension_numbers<[2], [2], [1], [1], [0, 0, 0, 1, 1, 1], [0], [0]>} : vector<4x8x8xbf16>, vector<4x8x8xbf16>, vector<4x8x8xf32> -> vector<4x8x8xf32>
    "tpu.trace_stop"() : () -> ()
    %89 = vector.shape_cast %6 : vector<8x8xf32> to vector<1x8x8xf32>
    %90 = vector.broadcast %89 : vector<1x8x8xf32> to vector<4x8x8xf32>
    %91 = arith.addf %88, %90 : vector<4x8x8xf32>
    %cst_20 = arith.constant dense<0xFF800000> : vector<4x8xf32>
    %92 = vector.multi_reduction <maximumf>, %91, %cst_20 [2] : vector<4x8x8xf32> to vector<4x8xf32>
    %93 = vector.shape_cast %92 : vector<4x8xf32> to vector<4x8x1xf32>
    %94 = vector.broadcast %93 : vector<4x8x1xf32> to vector<4x8x8xf32>
    %95 = arith.subf %91, %94 : vector<4x8x8xf32>
    %96 = math.exp %95 : vector<4x8x8xf32>
    %cst_21 = arith.constant dense<0.000000e+00> : vector<4x8xf32>
    %97 = vector.multi_reduction <add>, %96, %cst_21 [2] : vector<4x8x8xf32> to vector<4x8xf32>
    %98 = vector.shape_cast %97 : vector<4x8xf32> to vector<4x8x1xf32>
    %99 = tpu.reciprocal %98 {approx = true} : vector<4x8x1xf32> -> vector<4x8x1xf32>
    %100 = vector.broadcast %99 : vector<4x8x1xf32> to vector<4x8x8xf32>
    %101 = arith.mulf %96, %100 : vector<4x8x8xf32>
    %102 = arith.truncf %101 : vector<4x8x8xf32> to vector<4x8x8xbf16>
    %103 = arith.truncf %85 : vector<4x8x8xf32> to vector<4x8x8xbf16>
    "tpu.trace_start"() <{level = 10 : i32, message = "hqk,hkd->hqd"}> : () -> ()
    %cst_22 = arith.constant dense<0.000000e+00> : vector<4x8x8xf32>
    %104 = tpu.matmul %102, %103, %cst_22 {dimension_numbers = #tpu.dot_dimension_numbers<[2], [1], [1], [2], [0, 0, 0, 1, 1, 2], [0], [0]>} : vector<4x8x8xbf16>, vector<4x8x8xbf16>, vector<4x8x8xf32> -> vector<4x8x8xf32>
    "tpu.trace_stop"() : () -> ()
    %105 = tpu.transpose %104, [1, 0, 2] : vector<4x8x8xf32> -> vector<8x4x8xf32>
    %106 = vector.shape_cast %105 : vector<8x4x8xf32> to vector<8x32xf32>
    %107 = tpu.concatenate %76, %106 in 0 : vector<8x32xf32>, vector<8x32xf32> -> vector<16x32xf32>
    %108 = arith.truncf %107 : vector<16x32xf32> to vector<16x32xbf16>
    %c0_23 = arith.constant 0 : index
    %c0_24 = arith.constant 0 : index
    %c0_25 = arith.constant 0 : index
    %109 = vector.load %arg5[%c0_23, %c0_24, %c0_25] : memref<1x32x32xbf16, #tpu.memory_space<vmem>>, vector<1x32x32xbf16>
    %110 = vector.shape_cast %109 : vector<1x32x32xbf16> to vector<32x32xbf16>
    %cst_26 = arith.constant dense<0.000000e+00> : vector<16x32xf32>
    %111 = tpu.matmul %108, %110, %cst_26 {dimension_numbers = #tpu.dot_dimension_numbers<[1], [0], [0], [1], [0, 0, 1, 1], [], []>} : vector<16x32xbf16>, vector<32x32xbf16>, vector<16x32xf32> -> vector<16x32xf32>
    %112 = vector.extract_strided_slice %5 {offsets = [4, 0], sizes = [1, 32], strides = [1, 1]} : vector<9x32xf32> to vector<1x32xf32>
    %113 = vector.broadcast %112 : vector<1x32xf32> to vector<16x32xf32>
    %114 = arith.addf %111, %113 : vector<16x32xf32>
    %115 = arith.addf %3, %114 : vector<16x32xf32>
    %116 = vector.extract_strided_slice %5 {offsets = [2, 0], sizes = [1, 32], strides = [1, 1]} : vector<9x32xf32> to vector<1x32xf32>
    %117 = vector.extract_strided_slice %5 {offsets = [3, 0], sizes = [1, 32], strides = [1, 1]} : vector<9x32xf32> to vector<1x32xf32>
    %cst_27 = arith.constant dense<0.000000e+00> : vector<16xf32>
    %118 = vector.multi_reduction <add>, %115, %cst_27 [1] : vector<16x32xf32> to vector<16xf32>
    %119 = vector.shape_cast %118 : vector<16xf32> to vector<16x1xf32>
    %cst_28 = arith.constant 3.200000e+01 : f32
    %120 = vector.broadcast %cst_28 : f32 to vector<16x1xf32>
    %121 = arith.divf %119, %120 : vector<16x1xf32>
    %122 = vector.broadcast %121 : vector<16x1xf32> to vector<16x32xf32>
    %123 = arith.subf %115, %122 : vector<16x32xf32>
    %124 = arith.mulf %123, %123 : vector<16x32xf32>
    %cst_29 = arith.constant dense<0.000000e+00> : vector<16xf32>
    %125 = vector.multi_reduction <add>, %124, %cst_29 [1] : vector<16x32xf32> to vector<16xf32>
    %126 = vector.shape_cast %125 : vector<16xf32> to vector<16x1xf32>
    %cst_30 = arith.constant 3.200000e+01 : f32
    %127 = vector.broadcast %cst_30 : f32 to vector<16x1xf32>
    %128 = arith.divf %126, %127 : vector<16x1xf32>
    %129 = vector.broadcast %121 : vector<16x1xf32> to vector<16x32xf32>
    %130 = arith.subf %115, %129 : vector<16x32xf32>
    %cst_31 = arith.constant 9.99999974E-6 : f32
    %131 = vector.broadcast %cst_31 : f32 to vector<16x1xf32>
    %132 = arith.addf %128, %131 : vector<16x1xf32>
    %133 = math.rsqrt %132 : vector<16x1xf32>
    %134 = vector.broadcast %133 : vector<16x1xf32> to vector<16x32xf32>
    %135 = arith.mulf %130, %134 : vector<16x32xf32>
    %136 = vector.broadcast %116 : vector<1x32xf32> to vector<16x32xf32>
    %137 = arith.mulf %135, %136 : vector<16x32xf32>
    %138 = vector.broadcast %117 : vector<1x32xf32> to vector<16x32xf32>
    %139 = arith.addf %137, %138 : vector<16x32xf32>
    %140 = arith.truncf %139 : vector<16x32xf32> to vector<16x32xbf16>
    %c0_32 = arith.constant 0 : index
    %c0_33 = arith.constant 0 : index
    %c0_34 = arith.constant 0 : index
    %141 = vector.load %arg6[%c0_32, %c0_33, %c0_34] : memref<1x32x128xbf16, #tpu.memory_space<vmem>>, vector<1x32x128xbf16>
    %142 = vector.shape_cast %141 : vector<1x32x128xbf16> to vector<32x128xbf16>
    %cst_35 = arith.constant dense<0.000000e+00> : vector<16x128xf32>
    %143 = tpu.matmul %140, %142, %cst_35 {dimension_numbers = #tpu.dot_dimension_numbers<[1], [0], [0], [1], [0, 0, 1, 1], [], []>} : vector<16x32xbf16>, vector<32x128xbf16>, vector<16x128xf32> -> vector<16x128xf32>
    %c0_36 = arith.constant 0 : index
    %c0_37 = arith.constant 0 : index
    %c0_38 = arith.constant 0 : index
    %144 = vector.load %arg9[%c0_36, %c0_37, %c0_38] : memref<1x1x128xf32, #tpu.memory_space<vmem>>, vector<1x1x128xf32>
    %145 = vector.shape_cast %144 : vector<1x1x128xf32> to vector<1x128xf32>
    %146 = vector.broadcast %145 : vector<1x128xf32> to vector<16x128xf32>
    %147 = arith.addf %143, %146 : vector<16x128xf32>
    %cst_39 = arith.constant 5.000000e-01 : f32
    %148 = vector.broadcast %cst_39 : f32 to vector<16x128xf32>
    %149 = arith.mulf %148, %147 : vector<16x128xf32>
    %cst_40 = arith.constant 0.707106769 : f32
    %150 = vector.broadcast %cst_40 : f32 to vector<16x128xf32>
    %151 = arith.mulf %147, %150 : vector<16x128xf32>
    %152 = math.absf %151 : vector<16x128xf32>
    %cst_41 = arith.constant 0.327591091 : f32
    %153 = vector.broadcast %cst_41 : f32 to vector<16x128xf32>
    %154 = arith.mulf %153, %152 : vector<16x128xf32>
    %cst_42 = arith.constant 1.000000e+00 : f32
    %155 = vector.broadcast %cst_42 : f32 to vector<16x128xf32>
    %156 = arith.addf %155, %154 : vector<16x128xf32>
    %cst_43 = arith.constant 1.000000e+00 : f32
    %157 = vector.broadcast %cst_43 : f32 to vector<16x128xf32>
    %158 = arith.divf %157, %156 : vector<16x128xf32>
    %cst_44 = arith.constant 1.06140542 : f32
    %159 = vector.broadcast %cst_44 : f32 to vector<16x128xf32>
    %160 = arith.mulf %159, %158 : vector<16x128xf32>
    %cst_45 = arith.constant -1.45315206 : f32
    %161 = vector.broadcast %cst_45 : f32 to vector<16x128xf32>
    %162 = arith.addf %160, %161 : vector<16x128xf32>
    %163 = arith.mulf %162, %158 : vector<16x128xf32>
    %cst_46 = arith.constant 1.42141378 : f32
    %164 = vector.broadcast %cst_46 : f32 to vector<16x128xf32>
    %165 = arith.addf %163, %164 : vector<16x128xf32>
    %166 = arith.mulf %165, %158 : vector<16x128xf32>
    %cst_47 = arith.constant -0.284496725 : f32
    %167 = vector.broadcast %cst_47 : f32 to vector<16x128xf32>
    %168 = arith.addf %166, %167 : vector<16x128xf32>
    %169 = arith.mulf %168, %158 : vector<16x128xf32>
    %cst_48 = arith.constant 0.254829586 : f32
    %170 = vector.broadcast %cst_48 : f32 to vector<16x128xf32>
    %171 = arith.addf %169, %170 : vector<16x128xf32>
    %172 = arith.mulf %171, %158 : vector<16x128xf32>
    %cst_49 = arith.constant 0.000000e+00 : f32
    %173 = vector.broadcast %cst_49 : f32 to vector<16x128xf32>
    %174 = arith.subf %173, %152 : vector<16x128xf32>
    %175 = arith.mulf %174, %152 : vector<16x128xf32>
    %176 = math.exp %175 : vector<16x128xf32>
    %177 = arith.mulf %172, %176 : vector<16x128xf32>
    %cst_50 = arith.constant 1.000000e+00 : f32
    %178 = vector.broadcast %cst_50 : f32 to vector<16x128xf32>
    %179 = arith.subf %178, %177 : vector<16x128xf32>
    %cst_51 = arith.constant 0.000000e+00 : f32
    %180 = vector.broadcast %cst_51 : f32 to vector<16x128xf32>
    %181 = arith.cmpf oge, %151, %180 : vector<16x128xf32>
    %cst_52 = arith.constant 0.000000e+00 : f32
    %182 = vector.broadcast %cst_52 : f32 to vector<16x128xf32>
    %183 = arith.subf %182, %179 : vector<16x128xf32>
    %184 = arith.select %181, %179, %183 : vector<16x128xi1>, vector<16x128xf32>
    %cst_53 = arith.constant 1.000000e+00 : f32
    %185 = vector.broadcast %cst_53 : f32 to vector<16x128xf32>
    %186 = arith.addf %185, %184 : vector<16x128xf32>
    %187 = arith.mulf %149, %186 : vector<16x128xf32>
    %188 = arith.truncf %187 : vector<16x128xf32> to vector<16x128xbf16>
    %c0_54 = arith.constant 0 : index
    %c0_55 = arith.constant 0 : index
    %c0_56 = arith.constant 0 : index
    %189 = vector.load %arg7[%c0_54, %c0_55, %c0_56] : memref<1x128x32xbf16, #tpu.memory_space<vmem>>, vector<1x128x32xbf16>
    %190 = vector.shape_cast %189 : vector<1x128x32xbf16> to vector<128x32xbf16>
    %cst_57 = arith.constant dense<0.000000e+00> : vector<16x32xf32>
    %191 = tpu.matmul %188, %190, %cst_57 {dimension_numbers = #tpu.dot_dimension_numbers<[1], [0], [0], [1], [0, 0, 1, 1], [], []>} : vector<16x128xbf16>, vector<128x32xbf16>, vector<16x32xf32> -> vector<16x32xf32>
    %192 = vector.extract_strided_slice %5 {offsets = [5, 0], sizes = [1, 32], strides = [1, 1]} : vector<9x32xf32> to vector<1x32xf32>
    %193 = vector.broadcast %192 : vector<1x32xf32> to vector<16x32xf32>
    %194 = arith.addf %191, %193 : vector<16x32xf32>
    %195 = arith.addf %115, %194 : vector<16x32xf32>
    %c0_58 = arith.constant 0 : index
    %c0_59 = arith.constant 0 : index
    %196 = vector.load %arg12[%c0_58, %c0_59] : memref<16x32xf32, #tpu.memory_space<vmem>>, vector<16x32xf32>
    tpu.vector_store %arg12[%c0_58, %c0_59], %195 {strides = array<i32>} : memref<16x32xf32, #tpu.memory_space<vmem>>, vector<16x32xf32>,
    %c1_i32 = arith.constant 1 : i32
    %197 = arith.cmpi eq, %arg1, %c1_i32 : i32
    %198 = arith.extui %197 : i1 to i32
    %c0_i32_60 = arith.constant 0 : i32
    %199 = arith.cmpi ne, %198, %c0_i32_60 : i32
    scf.if %199 {
      %c0_61 = arith.constant 0 : index
      %c0_62 = arith.constant 0 : index
      %200 = vector.load %arg10[%c0_61, %c0_62] : memref<2x32xf32, #tpu.memory_space<vmem>>, vector<2x32xf32>
      %201 = vector.extract_strided_slice %200 {offsets = [0, 0], sizes = [1, 32], strides = [1, 1]} : vector<2x32xf32> to vector<1x32xf32>
      %202 = vector.extract_strided_slice %200 {offsets = [1, 0], sizes = [1, 32], strides = [1, 1]} : vector<2x32xf32> to vector<1x32xf32>
      %cst_63 = arith.constant dense<0.000000e+00> : vector<16xf32>
      %203 = vector.multi_reduction <add>, %195, %cst_63 [1] : vector<16x32xf32> to vector<16xf32>
      %204 = vector.shape_cast %203 : vector<16xf32> to vector<16x1xf32>
      %cst_64 = arith.constant 3.200000e+01 : f32
      %205 = vector.broadcast %cst_64 : f32 to vector<16x1xf32>
      %206 = arith.divf %204, %205 : vector<16x1xf32>
      %207 = vector.broadcast %206 : vector<16x1xf32> to vector<16x32xf32>
      %208 = arith.subf %195, %207 : vector<16x32xf32>
      %209 = arith.mulf %208, %208 : vector<16x32xf32>
      %cst_65 = arith.constant dense<0.000000e+00> : vector<16xf32>
      %210 = vector.multi_reduction <add>, %209, %cst_65 [1] : vector<16x32xf32> to vector<16xf32>
      %211 = vector.shape_cast %210 : vector<16xf32> to vector<16x1xf32>
      %cst_66 = arith.constant 3.200000e+01 : f32
      %212 = vector.broadcast %cst_66 : f32 to vector<16x1xf32>
      %213 = arith.divf %211, %212 : vector<16x1xf32>
      %214 = vector.broadcast %206 : vector<16x1xf32> to vector<16x32xf32>
      %215 = arith.subf %195, %214 : vector<16x32xf32>
      %cst_67 = arith.constant 9.99999974E-6 : f32
      %216 = vector.broadcast %cst_67 : f32 to vector<16x1xf32>
      %217 = arith.addf %213, %216 : vector<16x1xf32>
      %218 = math.rsqrt %217 : vector<16x1xf32>
      %219 = vector.broadcast %218 : vector<16x1xf32> to vector<16x32xf32>
      %220 = arith.mulf %215, %219 : vector<16x32xf32>
      %221 = vector.broadcast %201 : vector<1x32xf32> to vector<16x32xf32>
      %222 = arith.mulf %220, %221 : vector<16x32xf32>
      %223 = vector.broadcast %202 : vector<1x32xf32> to vector<16x32xf32>
      %224 = arith.addf %222, %223 : vector<16x32xf32>
      %225 = vector.shape_cast %224 : vector<16x32xf32> to vector<2x8x32xf32>
      %c0_68 = arith.constant 0 : index
      %c0_69 = arith.constant 0 : index
      %c0_70 = arith.constant 0 : index
      %226 = vector.load %arg11[%c0_68, %c0_69, %c0_70] : memref<2x8x32xf32, #tpu.memory_space<vmem>>, vector<2x8x32xf32>
      tpu.vector_store %arg11[%c0_68, %c0_69, %c0_70], %225 {strides = array<i32>} : memref<2x8x32xf32, #tpu.memory_space<vmem>>, vector<2x8x32xf32>,
    } else {
    }
    return
  }
  func.func @transform_0(%arg0: i32, %arg1: i32) -> (i32, i32) {
    %c0_i32 = arith.constant 0 : i32
    %c0_i32_0 = arith.constant 0 : i32
    %c0_i32_1 = arith.constant 0 : i32
    return %c0_i32, %c0_i32_0 : i32, i32
  }
  func.func @transform_1(%arg0: i32, %arg1: i32) -> (i32, i32, i32) {
    %c0_i32 = arith.constant 0 : i32
    %c0_i32_0 = arith.constant 0 : i32
    %c0_i32_1 = arith.constant 0 : i32
    return %arg0, %c0_i32, %c0_i32_0 : i32, i32, i32
  }
  func.func @transform_2(%arg0: i32, %arg1: i32) -> (i32, i32, i32) {
    %c0_i32 = arith.constant 0 : i32
    %c0_i32_0 = arith.constant 0 : i32
    %c0_i32_1 = arith.constant 0 : i32
    return %arg1, %c0_i32, %c0_i32_0 : i32, i32, i32
  }
  func.func @transform_3(%arg0: i32, %arg1: i32) -> (i32, i32, i32) {
    %c0_i32 = arith.constant 0 : i32
    %c0_i32_0 = arith.constant 0 : i32
    %c0_i32_1 = arith.constant 0 : i32
    return %arg1, %c0_i32, %c0_i32_0 : i32, i32, i32
  }
  func.func @transform_4(%arg0: i32, %arg1: i32) -> (i32, i32, i32) {
    %c0_i32 = arith.constant 0 : i32
    %c0_i32_0 = arith.constant 0 : i32
    %c0_i32_1 = arith.constant 0 : i32
    return %arg1, %c0_i32, %c0_i32_0 : i32, i32, i32
  }
  func.func @transform_5(%arg0: i32, %arg1: i32) -> (i32, i32, i32) {
    %c0_i32 = arith.constant 0 : i32
    %c0_i32_0 = arith.constant 0 : i32
    %c0_i32_1 = arith.constant 0 : i32
    return %arg1, %c0_i32, %c0_i32_0 : i32, i32, i32
  }
  func.func @transform_6(%arg0: i32, %arg1: i32) -> (i32, i32, i32) {
    %c0_i32 = arith.constant 0 : i32
    %c0_i32_0 = arith.constant 0 : i32
    %c0_i32_1 = arith.constant 0 : i32
    return %arg1, %c0_i32, %c0_i32_0 : i32, i32, i32
  }
  func.func @transform_7(%arg0: i32, %arg1: i32) -> (i32, i32, i32) {
    %c0_i32 = arith.constant 0 : i32
    %c0_i32_0 = arith.constant 0 : i32
    %c0_i32_1 = arith.constant 0 : i32
    return %arg1, %c0_i32, %c0_i32_0 : i32, i32, i32
  }
  func.func @transform_8(%arg0: i32, %arg1: i32) -> (i32, i32) {
    %c0_i32 = arith.constant 0 : i32
    %c0_i32_0 = arith.constant 0 : i32
    %c0_i32_1 = arith.constant 0 : i32
    return %c0_i32, %c0_i32_0 : i32, i32
  }
  func.func @transform_9(%arg0: i32, %arg1: i32) -> (i32, i32, i32) {
    %c0_i32 = arith.constant 0 : i32
    %c0_i32_0 = arith.constant 0 : i32
    %c0_i32_1 = arith.constant 0 : i32
    return %arg0, %c0_i32, %c0_i32_0 : i32, i32, i32
  }
}

</mosaic_0001>

<bundles_post_ra>
// kernel: tpu_custom_call.1
= control target key start
LH: loop header
LB: loop body
LE: loop exit
PB: predicated region body
PF: predicated region fallthrough
CT: control target
= control target key end

     0   :  { %s4300_s0 = inlined_call_operand.vmem [shape: f32[8,8], index: 0, kind: input, shape index: {}]   ;;  %s4301_s1 = inlined_call_operand.vmem [shape: f32[2,8,32], index: 1, kind: input, shape index: {}]   ;;  %s4302_s2 = inlined_call_operand.vmem [shape: bf16[2,32,96], index: 2, kind: input, shape index: {}]   ;;  %s4303_s3 = inlined_call_operand.vmem [shape: bf16[2,32,32], index: 3, kind: input, shape index: {}]   ;;  %s4304_s4 = inlined_call_operand.vmem [shape: bf16[2,32,128], index: 4, kind: input, shape index: {}]   ;;  %s4305_s5 = inlined_call_operand.vmem [shape: bf16[2,128,32], index: 5, kind: input, shape index: {}]   ;;  %s4306_s6 = inlined_call_operand.vmem [shape: f32[2,9,32], index: 6, kind: input, shape index: {}]   ;;  %s4307_s7 = inlined_call_operand.vmem [shape: f32[2,1,128], index: 7, kind: input, shape index: {}]   ;;  %s4308_s8 = inlined_call_operand.vmem [shape: f32[2,32], index: 8, kind: input, shape index: {}]   ;;  %s4309_s9 = inlined_call_operand.hbm [shape: f32[2,8,32], index: 9, kind: output, shape index: {}]  }
   0x1   :  { %4310 = sst [smem:[#allocation6_spill]] %s4302_s2 }
   0x2   :  { %14 = vsyncpa [#allocation4], 0  ;;  %s3704_s30 = smov 0   ;;  %s3706_s10 = smov 0  }
   0x3   :  { %s3708_s11 = smov 0  }
   0x4 LB: > { %s29_s13 = sadd.s32 1, %s3633_s10  ;;  %p3193_p1 = scmp.ge.s32.totalorder %s3637_s11, 1  ;;  %s3637_s11 = sphi %s3708_s11, %s20_s11   ;;  %s3633_s10 = sphi %s3706_s10, %s4315_s10   ;;  %s3629_s30 = sphi %s3704_s30, %s4314_s30  }
   0x5   : > { %p30_p0 = scmp.ge.s32.totalorder %s29_s13, 2  ;;  %p359_p2 = scmp.lt.s32.totalorder %s3637_s11, 3 }
   0x7   : > { %s4317_s13 = smov (%p30_p0, %s29_s13), 0  ;;  %p360_p3 = pnand %p3193_p1, %p359_p2 }
   0x8   : > { %p424_p4 = scmp.lt.s32.totalorder (!%p360_p3), %s3629_s30, 1  ;;  %s4311_s2 = sld [smem:[#allocation6_spill]] (!%p360_p3) }
   0x9   : > { %363 = sbr.rel (%p360_p3) target bundleno = 3719 (0xe87), region = 56  ;;  %p3204_p5 = scmp.ne.s32.totalorder (!%p360_p3), %s3629_s30, 0 }
  0x10   : > { %s3727_s14 = scalar_select %p424_p4, %s3629_s30, 1 }
  0x11   : > { %457 = sbr.rel (%p3204_p5) target bundleno = 24 (0x18), region = 60  ;;  %v458_v0 = vld [vmem:[%s4301_s1] sm:$0xff] (!%p3204_p5)  ;;  %vm460_vm0 = vcmask (!%p3204_p5), 261120   ;;  %v459_v1 = vld [vmem:[%s4301_s1 + $0x8] sm:$0xff] (!%p3204_p5) }
  0x12   : > { %s3261_s15 = sshll.u32 %s3727_s14, 4  ;;  %s3264_s16 = sshll.u32 %s3727_s14, 6  ;;  %461 = vst.msk [vmem:[#allocation2] sm:$0xff] (!%p3204_p5), %vm460_vm0, %v458_v0  ;;  %462 = vst.msk [vmem:[#allocation2 + $0x8] sm:$0xff] (!%p3204_p5), %vm460_vm0, %v459_v1 }
  0x13   : > { %s3734_s19 = scalar_lea.vmem %s4311_s2, %s3261_s15  ;;  %s3739_s22 = scalar_lea.vmem %s4303_s3, %s3261_s15 }
  0x14   : > { %s3744_s25 = scalar_lea.vmem %s4304_s4, %s3261_s15  ;;  %s3749_s28 = scalar_lea.vmem %s4305_s5, %s3264_s16 }
  0x15   : > { %s3754_s17 = scalar_lea.vmem %s4306_s6, %s3261_s15  ;;  %s451_s20 = scalar_lea.vmem %s4307_s7, %s3727_s14 }
  0x18 PF: > { %vm468_vm1 = vcmask 261120   ;;  %v3516_v16 = vld [vmem:[%s3734_s19] sm:$0xff]   ;;  %v3639_v17 = vmov 0.0   ;;  %v3517_v18 = vld [vmem:[%s3734_s19 + $0x8] sm:$0xff]   ;;  %vm3640_vm2 = vmmov 0   ;;  %v496_v19 = vlaneseq  ;;  %s3641_s2 = smov 32  }
  0x19   : > { %v463_v2 = vld [vmem:[#allocation2] sm:$0xff]  ;;  %v464_v3 = vld [vmem:[#allocation2 + $0x8] sm:$0xff]  ;;  %3316 = vmatprep.subr.bf16.mxu0 %v3639_v17  ;;  %3336 = vmatprep.subr.bf16.mxu1 %v3639_v17  ;;  %s3642_s12 = smov 96   ;;  %s3643_s15 = smov 120   ;;  %v3647_v57 = vmov 1983009808  }
  0x1a   : > { %v469_v4 = vsel %vm468_vm1, %v463_v2, 0.0  ;;  %v472_v5 = vsel %vm468_vm1, %v464_v3, 0.0  ;;  %3317 = vmatpush3.bf16.msra.mxu0 %v3516_v16  ;;  %3320 = vmatprep.mubr.msk.bf16.mxu0 %vm3640_vm2, %v3639_v17  ;;  %v3780_v20 = vshrl.u32 %v496_v19, 7  ;;  %v465_v22 = vld [vmem:[%s3754_s17] sm:$0xff]  ;;  %s3644_s19 = smov 112   ;;  %s3645_s26 = smov 104   ;;  %v608_v58 = vunpack.c.l.s4 %v3647_v57 }
  0x1b   : > { %470 = vadd.xlane.f32.xlu0 %v469_v4  ;;  %3318 = vmatprep.subr.bf16.mxu0 %v3639_v17  ;;  %v3208_v56 = vld [vmem:[%s3754_s17 + $0x8] ss:$0 sm:$0xff]  ;;  %s3646_s27 = smov 64   ;;  %v3648_v60 = vmov 1934713408   ;;  %vm1059_vm3 = vcmask 64512  }
  0x1c   : > { %3338 = vmatprep.mubr.msk.bf16.mxu1 %vm3640_vm2, %v3639_v17  ;;  %v577_v21 = vsub.s32 7, %v3780_v20  ;;  %v498_v30 = vsub.s32 0, %v3780_v20  ;;  %v504_v34 = vsub.s32 1, %v3780_v20  ;;  %v571_v43 = vsub.s32 6, %v3780_v20  ;;  %s3650_s21 = smov 8   ;;  %s3651_s23 = smov 24  }
  0x1d   : > { %v640_v61 = vunpack.c.l.s4 %v3648_v60  ;;  %v609_v62 = vunpack.c.0.s8 %v608_v58  ;;  %vm1299_vm4 = vcmask 1043456   ;;  %vm1630_vm5 = vcmask 130048   ;;  %p3256_p6 = scmp.ne.s32.totalorder %s3629_s30, 1 }
  0x1e   : > { %3319 = vmatpush3.bf16.msra.mxu0 %v3517_v18  ;;  %v578_v23 = vrot.slane %v465_v22, %v577_v21  ;;  %v499_v33 = vrot.slane %v465_v22, %v498_v30  ;;  %v505_v38 = vrot.slane %v465_v22, %v504_v34  ;;  %v572_v46 = vrot.slane %v465_v22, %v571_v43 }
  0x1f   : > { %473 = vadd.xlane.f32.xlu0 %v472_v5  ;;  %3324 = vmatprep.subr.bf16.mxu0 %v3639_v17  ;;  %v641_v1 = vunpack.c.0.s8 %v640_v61  ;;  %vm1632_vm6 = vcmask 195584  }
  0x35   : > { %580 = vrot.lane.b32.xlu0 %v578_v23, %s3641_s2 }
  0xa8   : > { %v471_v6 = vpop.xlane.xlu0 %470 }
  0xa9   : > { %v476_v7 = vmul.f32 0.03125, %v471_v6 }
  0xab   : > { %v478_v8 = vsub.f32 %v463_v2, %v476_v7  ;;  %v3820_v2 = vsub.s32 %v609_v62, %v3780_v20 }
  0xac   : > { %v474_v9 = vpop.xlane.xlu0 %473 }
  0xad   : > { %v477_v10 = vmul.f32 0.03125, %v474_v9  ;;  %v480_v11 = vmul.f32 %v478_v8, %v478_v8  ;;  %v3823_v9 = vsub.s32 %v641_v1, %v3780_v20 }
  0xaf   : > { %v479_v12 = vsub.f32 %v464_v3, %v477_v10  ;;  %v482_v13 = vsel %vm468_vm1, %v480_v11, 0.0 }
  0xb0   : > { %483 = vadd.xlane.f32.xlu1 %v482_v13  ;;  %v3795_v44 = vpop.permute.xlu0 %580 }
  0xb1   : > { %v481_v14 = vmul.f32 %v479_v12, %v479_v12 }
  0xb3   : > { %v485_v15 = vsel %vm468_vm1, %v481_v14, 0.0 }
  0xb4   : > { %486 = vadd.xlane.f32.xlu1 %v485_v15 }
 0x13d   : > { %v484_v24 = vpop.xlane.xlu1 %483 }
 0x13e   : > { %v488_v25 = vmul.f32 0.03125, %v484_v24 }
 0x140   : > { %v490_v26 = vadd.f32 1e-05, %v488_v25 }
 0x141   : > { %v487_v27 = vpop.xlane.xlu1 %486 }
 0x142   : > { %3530 = vrsqrt.f32 %v490_v26  ;;  %v489_v28 = vmul.f32 0.03125, %v487_v27 }
 0x144   : > { %v491_v29 = vadd.f32 1e-05, %v489_v28 }
 0x146   : > { %3532 = vrsqrt.f32 %v491_v29 }
 0x14c   : > { %v3531_v31 = vpop.eup %3530 }
 0x14d   : > { %v494_v32 = vmul.f32 %v3531_v31, %v478_v8 }
 0x14f   : > { %v500_v37 = vmul.f32 %v499_v33, %v494_v32 }
 0x150   : > { %v3533_v35 = vpop.eup %3532 }
 0x151   : > { %v495_v36 = vmul.f32 %v3533_v35, %v479_v12  ;;  %v506_v40 = vadd.f32 %v505_v38, %v500_v37 }
 0x153   : > { %v501_v39 = vmul.f32 %v499_v33, %v495_v36 }
 0x155   : > { %v507_v41 = vadd.f32 %v505_v38, %v501_v39 }
 0x157   : > { %v508_v42 = vpack.c.bf16 %v507_v41, %v506_v40 }
 0x159   : > { %3321 = vmatmul.mubr.msk.bf16.vlgmr.msra.gmra.mrb[0].mxu0 %vm468_vm1, %v508_v42 }
 0x15a   : > { %3326 = vmatprep.mubr.msk.bf16.mxu0 %vm3640_vm2, %v3639_v17 }
 0x22c   : > { %v3797_v45 = vpop.f32.mrb[0].mxu0 }
 0x22d   : > { %v583_v47 = vadd.f32 %v3795_v44, %v3797_v45  ;;  %v3322_v48 = vpop.f32.mrb[1].mxu0  ;;  %v573_v54 = vadd.f32 %v572_v46, %v3797_v45 }
 0x22e   : > { %v3801_v49 = vpop.f32.mrb[2].mxu0 }
 0x22f   : > { %v3804_v50 = vadd.f32 %v572_v46, %v3801_v49  ;;  %v3323_v51 = vpop.f32.mrb[3].mxu0  ;;  %748 = vrot.lane.b32.xlu0 %v583_v47, %s3642_s12  ;;  %742 = vrot.lane.b32.xlu1 %v583_v47, %s3643_s15 }
 0x233   : > { %744 = vrot.lane.b32.xlu1 %v583_v47, %s3644_s19 }
 0x237   : > { %746 = vrot.lane.b32.xlu1 %v583_v47, %s3645_s26 }
 0x2a1   : > { %v743_v52 = vpop.permute.xlu1 %742  ;;  %v749_v59 = vpop.permute.xlu0 %748 }
 0x2a2   : > { %750 = vrot.lane.b32.xlu1 %v743_v52, %s3642_s12 }
 0x2a5   : > { %v745_v53 = vpop.permute.xlu1 %744 }
 0x2a6   : > { %752 = vrot.lane.b32.xlu0 %v745_v53, %s3642_s12 }
 0x2a9   : > { %v747_v55 = vpop.permute.xlu1 %746 }
 0x2aa   : > { %596 = vrot.lane.b32.xlu0 %v573_v54, %s3643_s15  ;;  %754 = vrot.lane.b32.xlu1 %v747_v55, %s3642_s12 }
 0x2ae   : > { %602 = vrot.lane.b32.xlu0 %v573_v54, %s3645_s26  ;;  %599 = vrot.lane.b32.xlu1 %v573_v54, %s3644_s19 }
 0x2b2   : > { %590 = vrot.lane.b32.xlu1 %v3208_v56, %s3646_s27 }
 0x314   : > { %v751_v63 = vpop.permute.xlu1 %750 }
 0x318   : > { %v753_v0 = vpop.permute.xlu0 %752 }
 0x319   : > { %v760_v3 = vcombine.low %v749_v59, %v753_v0  ;;  %v761_v4 = vcombine.high %v749_v59, %v753_v0 }
 0x31b   : > { %v768_v10 = vrot.slane %v760_v3, %v3820_v2  ;;  %v775_v11 = vrot.slane %v761_v4, %v3820_v2 }
 0x31c   : > { %v597_v5 = vpop.permute.xlu0 %596  ;;  %v755_v6 = vpop.permute.xlu1 %754 }
 0x31d   : > { %v776_v7 = vcombine.low %v751_v63, %v755_v6  ;;  %v777_v8 = vcombine.high %v751_v63, %v755_v6 }
 0x31f   : > { %v784_v12 = vrot.slane %v776_v7, %v3820_v2  ;;  %v791_v13 = vrot.slane %v777_v8, %v3820_v2 }
 0x320   : > { %v603_v14 = vpop.permute.xlu0 %602  ;;  %v600_v15 = vpop.permute.xlu1 %599 }
 0x321   : > { %v792_v16 = vcombine.low %v768_v10, %v784_v12  ;;  %v793_v18 = vcombine.high %v768_v10, %v784_v12  ;;  %v808_v19 = vcombine.low %v775_v11, %v791_v13  ;;  %v809_v21 = vcombine.high %v775_v11, %v791_v13 }
 0x322   : > { %v621_v22 = vcombine.low %v597_v5, %v603_v14  ;;  %v622_v23 = vcombine.high %v597_v5, %v603_v14  ;;  %v605_v24 = vcombine.low %v573_v54, %v600_v15  ;;  %v606_v25 = vcombine.high %v573_v54, %v600_v15 }
 0x323   : > { %v800_v26 = vrot.slane %v792_v16, %v3823_v9  ;;  %v807_v27 = vrot.slane %v793_v18, %v3823_v9  ;;  %v816_v28 = vrot.slane %v808_v19, %v3823_v9  ;;  %v823_v29 = vrot.slane %v809_v21, %v3823_v9 }
 0x324   : > { %v629_v31 = vrot.slane %v621_v22, %v3820_v2  ;;  %v636_v32 = vrot.slane %v622_v23, %v3820_v2  ;;  %v613_v33 = vrot.slane %v605_v24, %v3820_v2  ;;  %v620_v35 = vrot.slane %v606_v25, %v3820_v2  ;;  %v3837_v46 = vpop.permute.xlu1 %590 }
 0x325   : > { %v828_v36 = vcombine.low %v800_v26, %v807_v27  ;;  %v3211_v37 = vcombine.high %v800_v26, %v807_v27  ;;  %v844_v38 = vcombine.low %v816_v28, %v823_v29  ;;  %v3212_v39 = vcombine.high %v816_v28, %v823_v29 }
 0x326   : > { %v637_v40 = vcombine.low %v613_v33, %v629_v31  ;;  %v638_v41 = vcombine.high %v613_v33, %v629_v31  ;;  %v653_v42 = vcombine.low %v620_v35, %v636_v32  ;;  %v654_v43 = vcombine.high %v620_v35, %v636_v32 }
 0x327   : > { %v835_v47 = vrot.slane %v828_v36, %v3820_v2  ;;  %v843_v48 = vrot.slane %v3211_v37, %v3820_v2  ;;  %v851_v51 = vrot.slane %v844_v38, %v3820_v2  ;;  %v859_v52 = vrot.slane %v3212_v39, %v3820_v2 }
 0x328   : > { %v645_v53 = vrot.slane %v637_v40, %v3823_v9  ;;  %v652_v54 = vrot.slane %v638_v41, %v3823_v9  ;;  %v661_v55 = vrot.slane %v653_v42, %v3823_v9  ;;  %v668_v56 = vrot.slane %v654_v43, %v3823_v9  ;;  %v3892_v43 = vld [vmem:[%s4300_s0] sm:$0xff] }
 0x329   : > { %v3849_v57 = vadd.f32 %v3837_v46, %v3797_v45  ;;  %v860_v58 = vcombine.low %v835_v47, %v843_v48  ;;  %v876_v59 = vcombine.low %v851_v51, %v859_v52  ;;  %v861_v3 = vcombine.high %v835_v47, %v843_v48 }
 0x32a   : > { %v673_v60 = vcombine.low %v645_v53, %v652_v54  ;;  %v3209_v61 = vcombine.high %v645_v53, %v652_v54  ;;  %v689_v62 = vcombine.low %v661_v55, %v668_v56  ;;  %v3210_v63 = vcombine.high %v661_v55, %v668_v56 }
 0x32b   : > { %899 = vrot.lane.b32.xlu1 %v3849_v57, %s3644_s19  ;;  %897 = vrot.lane.b32.xlu0 %v3849_v57, %s3643_s15  ;;  %v868_v0 = vrot.slane %v860_v58, %v3823_v9  ;;  %v884_v1 = vrot.slane %v876_v59, %v3823_v9  ;;  %v875_v8 = vrot.slane %v861_v3, %v3823_v9 }
 0x32c   : > { %v680_v45 = vrot.slane %v673_v60, %v3820_v2  ;;  %v688_v4 = vrot.slane %v3209_v61, %v3820_v2  ;;  %v696_v5 = vrot.slane %v689_v62, %v3820_v2  ;;  %v704_v6 = vrot.slane %v3210_v63, %v3820_v2 }
 0x32d   : > { %v892_v7 = vcombine.low %v868_v0, %v884_v1  ;;  %v877_v10 = vcombine.high %v851_v51, %v859_v52  ;;  %v893_v23 = vcombine.high %v868_v0, %v884_v1 }
 0x32e   : > { %v705_v11 = vcombine.low %v680_v45, %v688_v4  ;;  %v721_v12 = vcombine.low %v696_v5, %v704_v6  ;;  %v706_v15 = vcombine.high %v680_v45, %v688_v4  ;;  %v722_v16 = vcombine.high %v696_v5, %v704_v6 }
 0x32f   : > { %901 = vrot.lane.b32.xlu1 %v3849_v57, %s3645_s26  ;;  %v1055_v13 = vpack.c.bf16 %v892_v7, %v892_v7  ;;  %v891_v14 = vrot.slane %v877_v10, %v3823_v9  ;;  %v1056_v29 = vpack.c.bf16 %v893_v23, %v893_v23 }
 0x330   : > { %v713_v18 = vrot.slane %v705_v11, %v3823_v9  ;;  %v729_v19 = vrot.slane %v721_v12, %v3823_v9  ;;  %v720_v26 = vrot.slane %v706_v15, %v3823_v9  ;;  %v736_v27 = vrot.slane %v722_v16, %v3823_v9 }
 0x331   : > { %v1064_v21 = vsel %vm1059_vm3, %v1055_v13, 0  ;;  %v894_v22 = vcombine.low %v875_v8, %v891_v14  ;;  %v1110_v33 = vsel %vm1059_vm3, %v1056_v29, 0  ;;  %v895_v35 = vcombine.high %v875_v8, %v891_v14 }
 0x332   : > { %3325 = vmatpush3.bf16.xpose.msra.mxu0 %v1064_v21  ;;  %v737_v25 = vcombine.low %v713_v18, %v729_v19  ;;  %v739_v32 = vcombine.low %v720_v26, %v736_v27  ;;  %v738_v37 = vcombine.high %v713_v18, %v729_v19  ;;  %v740_v41 = vcombine.high %v720_v26, %v736_v27 }
 0x333   : > { %v1057_v24 = vpack.c.bf16 %v894_v22, %v894_v22  ;;  %3330 = vmatprep.subr.bf16.mxu0 %v3639_v17  ;;  %v1058_v38 = vpack.c.bf16 %v895_v35, %v895_v35  ;;  %v584_v11 = vadd.f32 %v3795_v44, %v3801_v49 }
 0x334   : > { %v1051_v31 = vpack.c.bf16 %v737_v25, %v737_v25  ;;  %v1053_v36 = vpack.c.bf16 %v739_v32, %v739_v32  ;;  %v1052_v39 = vpack.c.bf16 %v738_v37, %v738_v37  ;;  %v1054_v42 = vpack.c.bf16 %v740_v41, %v740_v41 }
 0x335   : > { %v1156_v28 = vsel %vm1059_vm3, %v1057_v24, 0  ;;  %v1202_v40 = vsel %vm1059_vm3, %v1058_v38, 0 }
 0x336   : > { %3337 = vmatpush3.bf16.xpose.msra.mxu1 %v1156_v28 }
 0x337   : > { %3348 = vmatprep.subr.bf16.mxu1 %v3639_v17 }
 0x339   : > { %3327 = vmatmul.mubr.msk.bf16.vlgmr.msra.gmra.mrb[4].mxu0 %vm1059_vm3, %v1051_v31 }
 0x33a   : > { %3331 = vmatpush3.bf16.xpose.msra.mxu0 %v1110_v33  ;;  %3332 = vmatprep.mubr.msk.bf16.mxu0 %vm3640_vm2, %v3639_v17 }
 0x33b   : > { %3342 = vmatprep.subr.bf16.mxu0 %v3639_v17 }
 0x33d   : > { %3339 = vmatmul.mubr.msk.bf16.vlgmr.msra.gmra.mrb[0].mxu1 %vm1059_vm3, %v1053_v36 }
 0x33e   : > { %3350 = vmatprep.mubr.msk.bf16.mxu1 %vm3640_vm2, %v3639_v17 }
 0x341   : > { %3333 = vmatmul.mubr.msk.bf16.vlgmr.msra.gmra.mrb[8].mxu0 %vm1059_vm3, %v1052_v39 }
 0x342   : > { %3343 = vmatpush3.bf16.xpose.msra.mxu0 %v1202_v40  ;;  %3344 = vmatprep.mubr.msk.bf16.mxu0 %vm3640_vm2, %v3639_v17 }
 0x343   : > { %3354 = vmatprep.subr.bf16.mxu0 %v3639_v17 }
 0x349   : > { %3345 = vmatmul.mubr.msk.bf16.vlgmr.msra.gmra.mrb[12].mxu0 %vm1059_vm3, %v1054_v42 }
 0x34a   : > { %3356 = vmatprep.mubr.msk.bf16.mxu0 %vm3640_vm2, %v3639_v17 }
 0x39d   : > { %v900_v12 = vpop.permute.xlu1 %899  ;;  %v898_v13 = vpop.permute.xlu0 %897 }
 0x3a1   : > { %v902_v14 = vpop.permute.xlu1 %901 }
 0x40c   : > { %v1100_v47 = vpop.f32.mrb[4].mxu0 }
 0x40d   : > { %v3895_v48 = vadd.f32 %v1100_v47, %v3892_v43  ;;  %v3328_v51 = vpop.f32.mrb[5].mxu0 }
 0x40e   : > { %v1103_v52 = vpop.f32.mrb[6].mxu0 }
 0x40f   : > { %v3329_v53 = vpop.f32.mrb[7].mxu0  ;;  %v1244_v54 = vsel %vm1059_vm3, %v3895_v48, -inf }
 0x410   : > { %v1192_v55 = vpop.f32.mrb[0].mxu1  ;;  %1245 = vmax.xlane.f32.xlu0 %v1244_v54 }
 0x411   : > { %v3900_v56 = vadd.f32 %v1192_v55, %v3892_v43  ;;  %v3340_v58 = vpop.f32.mrb[1].mxu1 }
 0x412   : > { %v1195_v59 = vpop.f32.mrb[2].mxu1 }
 0x413   : > { %v3341_v60 = vpop.f32.mrb[3].mxu1  ;;  %v1250_v61 = vsel %vm1059_vm3, %v3900_v56, -inf }
 0x414   : > { %v1146_v62 = vpop.f32.mrb[8].mxu0  ;;  %1251 = vmax.xlane.f32.xlu0 %v1250_v61 }
 0x415   : > { %v1147_v63 = vadd.f32 %v1146_v62, %v3892_v43  ;;  %v3334_v0 = vpop.f32.mrb[9].mxu0 }
 0x416   : > { %v1149_v1 = vpop.f32.mrb[10].mxu0 }
 0x417   : > { %v3335_v3 = vpop.f32.mrb[11].mxu0  ;;  %v1247_v45 = vsel %vm1059_vm3, %v1147_v63, -inf }
 0x418   : > { %1248 = vmax.xlane.f32.xlu1 %v1247_v45 }
 0x41c   : > { %v1238_v4 = vpop.f32.mrb[12].mxu0 }
 0x41d   : > { %v1239_v5 = vadd.f32 %v1238_v4, %v3892_v43  ;;  %v3346_v6 = vpop.f32.mrb[13].mxu0 }
 0x41e   : > { %v1241_v7 = vpop.f32.mrb[14].mxu0 }
 0x41f   : > { %v3347_v8 = vpop.f32.mrb[15].mxu0  ;;  %v1253_v10 = vsel %vm1059_vm3, %v1239_v5, -inf }
 0x420   : > { %1254 = vmax.xlane.f32.xlu0 %v1253_v10 }
 0x429   : > { %1781 = vrot.lane.b32.xlu1 %v584_v11, %s3643_s15 }
 0x42d   : > { %1785 = vrot.lane.b32.xlu1 %v584_v11, %s3645_s26 }
 0x431   : > { %905 = vrot.lane.b32.xlu1 %v898_v13, %s3646_s27 }
 0x435   : > { %909 = vrot.lane.b32.xlu1 %v902_v14, %s3646_s27 }
 0x436   : > { %1783 = vrot.lane.b32.xlu0 %v584_v11, %s3644_s19 }
 0x43a   : > { %903 = vrot.lane.b32.xlu0 %v3849_v57, %s3646_s27 }
 0x43e   : > { %907 = vrot.lane.b32.xlu0 %v900_v12, %s3646_s27 }
 0x442   : > { %1787 = vrot.lane.b32.xlu0 %v584_v11, %s3642_s12 }
 0x49d   : > { %v1246_v44 = vpop.xlane.xlu0 %1245 }
 0x49e   : > { %v1256_v37 = vsub.f32 %v3895_v48, %v1246_v44 }
 0x4a0   : > { %v1260_v55 = vmul.f32 1.442695, %v1256_v37 }
 0x4a1   : > { %v1252_v16 = vpop.xlane.xlu0 %1251 }
 0x4a2   : > { %v1258_v48 = vsub.f32 %v3900_v56, %v1252_v16 }
 0x4a4   : > { %v1264_v7 = vmul.f32 1.442695, %v1258_v48 }
 0x4a5   : > { %v1249_v15 = vpop.xlane.xlu1 %1248 }
 0x4a6   : > { %v1257_v31 = vsub.f32 %v1147_v63, %v1249_v15 }
 0x4a8   : > { %v1262_v42 = vmul.f32 1.442695, %v1257_v31 }
 0x4a9   : > { %v1782_v18 = vpop.permute.xlu1 %1781 }
 0x4aa   : > { %1789 = vrot.lane.b32.xlu1 %v1782_v18, %s3642_s12  ;;  %3534 = vpow2.f32 %v1262_v42 }
 0x4ab   : > { %3536 = vpow2.f32 %v1260_v55 }
 0x4ad   : > { %v1786_v19 = vpop.permute.xlu1 %1785  ;;  %v1255_v21 = vpop.xlane.xlu0 %1254 }
 0x4ae   : > { %1793 = vrot.lane.b32.xlu1 %v1786_v19, %s3642_s12  ;;  %v1259_v47 = vsub.f32 %v1239_v5, %v1255_v21 }
 0x4b0   : > { %v1266_v62 = vmul.f32 1.442695, %v1259_v47 }
 0x4b1   : > { %v906_v22 = vpop.permute.xlu1 %905  ;;  %v1784_v23 = vpop.permute.xlu0 %1783 }
 0x4b2   : > { %1791 = vrot.lane.b32.xlu0 %v1784_v23, %s3642_s12  ;;  %3538 = vpow2.f32 %v1266_v62 }
 0x4b3   : > { %3540 = vpow2.f32 %v1264_v7 }
 0x4b4   : > { %v3946_v18 = vpop.eup %3534 }
 0x4b5   : > { %v910_v24 = vpop.permute.xlu1 %909  ;;  %v904_v57 = vpop.permute.xlu0 %903 }
 0x4b6   : > { %1635 = vrot.lane.b32.xlu0 %v3804_v50, %s3643_s15  ;;  %v931_v25 = vcombine.low %v906_v22, %v910_v24  ;;  %v932_v26 = vcombine.high %v906_v22, %v910_v24  ;;  %v3950_v22 = vpop.eup %3536  ;;  %v1271_v24 = vsel %vm1059_vm3, %v3946_v18, 0.0 }
 0x4b8   : > { %v939_v32 = vrot.slane %v931_v25, %v3820_v2  ;;  %v946_v33 = vrot.slane %v932_v26, %v3820_v2 }
 0x4b9   : > { %v908_v27 = vpop.permute.xlu0 %907 }
 0x4ba   : > { %v915_v28 = vcombine.low %v904_v57, %v908_v27  ;;  %v916_v29 = vcombine.high %v904_v57, %v908_v27  ;;  %v1268_v57 = vsel %vm1059_vm3, %v3950_v22, 0.0 }
 0x4bc   : > { %v923_v35 = vrot.slane %v915_v28, %v3820_v2  ;;  %v930_v36 = vrot.slane %v916_v29, %v3820_v2  ;;  %v3954_v23 = vpop.eup %3538  ;;  %v3970_v28 = vadd.f32 %v3837_v46, %v3801_v49 }
 0x4bd   : > { %v3960_v25 = vpop.eup %3540  ;;  %v1277_v26 = vsel %vm1059_vm3, %v3954_v23, 0.0  ;;  %v1788_v29 = vpop.permute.xlu0 %1787 }
 0x4be   : > { %v947_v38 = vcombine.low %v923_v35, %v939_v32  ;;  %v948_v39 = vcombine.high %v923_v35, %v939_v32  ;;  %v963_v40 = vcombine.low %v930_v36, %v946_v33  ;;  %v964_v41 = vcombine.high %v930_v36, %v946_v33 }
 0x4bf   : > { %v1274_v27 = vsel %vm1059_vm3, %v3960_v25, 0.0 }
 0x4c0   : > { %v955_v51 = vrot.slane %v947_v38, %v3823_v9  ;;  %v962_v52 = vrot.slane %v948_v39, %v3823_v9  ;;  %v971_v53 = vrot.slane %v963_v40, %v3823_v9  ;;  %v978_v54 = vrot.slane %v964_v41, %v3823_v9 }
 0x4c2   : > { %v983_v58 = vcombine.low %v955_v51, %v962_v52  ;;  %v3213_v59 = vcombine.high %v955_v51, %v962_v52  ;;  %v999_v60 = vcombine.low %v971_v53, %v978_v54  ;;  %v3214_v61 = vcombine.high %v971_v53, %v978_v54 }
 0x4c4   : > { %v990_v63 = vrot.slane %v983_v58, %v3820_v2  ;;  %v998_v0 = vrot.slane %v3213_v59, %v3820_v2  ;;  %v1006_v1 = vrot.slane %v999_v60, %v3820_v2  ;;  %v1014_v3 = vrot.slane %v3214_v61, %v3820_v2 }
 0x4c6   : > { %v1015_v45 = vcombine.low %v990_v63, %v998_v0  ;;  %v1031_v4 = vcombine.low %v1006_v1, %v1014_v3  ;;  %v1016_v5 = vcombine.high %v990_v63, %v998_v0  ;;  %v1032_v6 = vcombine.high %v1006_v1, %v1014_v3 }
 0x4c8   : > { %v1023_v8 = vrot.slane %v1015_v45, %v3823_v9  ;;  %v1039_v56 = vrot.slane %v1031_v4, %v3823_v9  ;;  %v1030_v10 = vrot.slane %v1016_v5, %v3823_v9  ;;  %v1046_v11 = vrot.slane %v1032_v6, %v3823_v9 }
 0x4ca   : > { %v1047_v12 = vcombine.low %v1023_v8, %v1039_v56  ;;  %v1048_v13 = vcombine.high %v1023_v8, %v1039_v56  ;;  %v3942_v14 = vcombine.high %v1030_v10, %v1046_v11  ;;  %v3944_v44 = vcombine.low %v1030_v10, %v1046_v11 }
 0x4cc   : > { %v1292_v15 = vpack.c.bf16 %v1047_v12, %v1047_v12  ;;  %v1293_v16 = vpack.c.bf16 %v1048_v13, %v1048_v13 }
 0x4ce   : > { %v1301_v19 = vsel %vm1299_vm4, %v1292_v15, 0  ;;  %v1347_v21 = vsel %vm1299_vm4, %v1293_v16, 0 }
 0x4cf   : > { %3349 = vmatpush3.bf16.msra.mxu1 %v1301_v19  ;;  %3355 = vmatpush3.bf16.msra.mxu0 %v1347_v21  ;;  %v1295_v19 = vpack.c.bf16 %v3942_v14, %v3942_v14  ;;  %v1294_v14 = vpack.c.bf16 %v3944_v44, %v3944_v44 }
 0x4d0   : > { %3366 = vmatprep.subr.bf16.mxu0 %v3639_v17  ;;  %3360 = vmatprep.subr.bf16.mxu1 %v3639_v17 }
 0x4d2   : > { %1272 = vadd.xlane.f32.xlu1 %v1271_v24 }
 0x4d5   : > { %1269 = vadd.xlane.f32.xlu0 %v1268_v57 }
 0x4d6   : > { %1278 = vadd.xlane.f32.xlu1 %v1277_v26 }
 0x4d9   : > { %1275 = vadd.xlane.f32.xlu0 %v1274_v27 }
 0x4e7   : > { %1638 = vrot.lane.b32.xlu1 %v3804_v50, %s3644_s19 }
 0x4eb   : > { %1936 = vrot.lane.b32.xlu1 %v3970_v28, %s3643_s15 }
 0x4ef   : > { %1641 = vrot.lane.b32.xlu0 %v3804_v50, %s3645_s26 }
 0x51c   : > { %v1790_v31 = vpop.permute.xlu1 %1789 }
 0x520   : > { %v1794_v33 = vpop.permute.xlu1 %1793 }
 0x521   : > { %v1815_v37 = vcombine.low %v1790_v31, %v1794_v33  ;;  %v1816_v38 = vcombine.high %v1790_v31, %v1794_v33 }
 0x523   : > { %v1823_v49 = vrot.slane %v1815_v37, %v3820_v2  ;;  %v1830_v46 = vrot.slane %v1816_v38, %v3820_v2 }
 0x524   : > { %v1792_v32 = vpop.permute.xlu0 %1791 }
 0x525   : > { %v1799_v35 = vcombine.low %v1788_v29, %v1792_v32  ;;  %v1800_v36 = vcombine.high %v1788_v29, %v1792_v32 }
 0x527   : > { %v1807_v39 = vrot.slane %v1799_v35, %v3820_v2  ;;  %v1814_v40 = vrot.slane %v1800_v36, %v3820_v2 }
 0x528   : > { %v1636_v58 = vpop.permute.xlu0 %1635 }
 0x529   : > { %v1831_v41 = vcombine.low %v1807_v39, %v1823_v49  ;;  %v1832_v42 = vcombine.high %v1807_v39, %v1823_v49  ;;  %v1847_v47 = vcombine.low %v1814_v40, %v1830_v46  ;;  %v1848_v51 = vcombine.high %v1814_v40, %v1830_v46 }
 0x52a   : > { %v1439_v39 = vsel %vm1299_vm4, %v1295_v19, 0 }
 0x52b   : > { %v1839_v52 = vrot.slane %v1831_v41, %v3823_v9  ;;  %v1846_v53 = vrot.slane %v1832_v42, %v3823_v9  ;;  %v1855_v54 = vrot.slane %v1847_v47, %v3823_v9  ;;  %v1862_v55 = vrot.slane %v1848_v51, %v3823_v9 }
 0x52d   : > { %v1867_v59 = vcombine.low %v1839_v52, %v1846_v53  ;;  %v3227_v61 = vcombine.high %v1839_v52, %v1846_v53  ;;  %v1883_v48 = vcombine.low %v1855_v54, %v1862_v55  ;;  %v3228_v62 = vcombine.high %v1855_v54, %v1862_v55 }
 0x52e   : > { %v1393_v52 = vsel %vm1299_vm4, %v1294_v14, 0 }
 0x52f   : > { %v1874_v0 = vrot.slane %v1867_v59, %v3820_v2  ;;  %v1882_v3 = vrot.slane %v3227_v61, %v3820_v2  ;;  %v1890_v45 = vrot.slane %v1883_v48, %v3820_v2  ;;  %v1898_v4 = vrot.slane %v3228_v62, %v3820_v2 }
 0x531   : > { %v1899_v8 = vcombine.low %v1874_v0, %v1882_v3  ;;  %v1915_v56 = vcombine.low %v1890_v45, %v1898_v4  ;;  %v1900_v33 = vcombine.high %v1874_v0, %v1882_v3  ;;  %v1916_v35 = vcombine.high %v1890_v45, %v1898_v4 }
 0x533   : > { %v1907_v24 = vrot.slane %v1899_v8, %v3823_v9  ;;  %v1923_v57 = vrot.slane %v1915_v56, %v3823_v9  ;;  %v1914_v53 = vrot.slane %v1900_v33, %v3823_v9  ;;  %v1930_v54 = vrot.slane %v1916_v35, %v3823_v9 }
 0x535   : > { %v1932_v46 = vcombine.high %v1907_v24, %v1923_v57 }
 0x537   : > { %v2095_v48 = vpack.c.bf16 %v1932_v46, %v1932_v46 }
 0x55f   : > { %v1273_v60 = vpop.xlane.xlu1 %1272 }
 0x560   : > { %3542 = vrcp.f32 %v1273_v60 }
 0x562   : > { %v1270_v63 = vpop.xlane.xlu0 %1269 }
 0x563   : > { %3544 = vrcp.f32 %v1270_v63  ;;  %v1279_v1 = vpop.xlane.xlu1 %1278 }
 0x564   : > { %3546 = vrcp.f32 %v1279_v1 }
 0x566   : > { %v1276_v5 = vpop.xlane.xlu0 %1275 }
 0x567   : > { %3548 = vrcp.f32 %v1276_v5  ;;  %v1639_v6 = vpop.permute.xlu1 %1638 }
 0x568   : > { %v1644_v7 = vcombine.low %v3804_v50, %v1639_v6  ;;  %v1645_v10 = vcombine.high %v3804_v50, %v1639_v6 }
 0x56a   : > { %v3543_v11 = vpop.eup %3542  ;;  %v1642_v12 = vpop.permute.xlu0 %1641  ;;  %v1652_v21 = vrot.slane %v1644_v7, %v3820_v2  ;;  %v1659_v27 = vrot.slane %v1645_v10, %v3820_v2  ;;  %v1934_v7 = vcombine.high %v1914_v53, %v1930_v54 }
 0x56b   : > { %v1285_v13 = vmul.f32 %v3543_v11, %v3946_v18  ;;  %v1660_v15 = vcombine.low %v1636_v58, %v1642_v12  ;;  %v1661_v16 = vcombine.high %v1636_v58, %v1642_v12  ;;  %v1931_v58 = vcombine.low %v1907_v24, %v1923_v57 }
 0x56d   : > { %v3545_v26 = vpop.eup %3544  ;;  %v1668_v50 = vrot.slane %v1660_v15, %v3820_v2  ;;  %v1675_v29 = vrot.slane %v1661_v16, %v3820_v2  ;;  %v1289_v31 = vpack.c.bf16 %v1285_v13, %v1285_v13  ;;  %v2094_v4 = vpack.c.bf16 %v1931_v58, %v1931_v58 }
 0x56e   : > { %v3547_v18 = vpop.eup %3546  ;;  %v1284_v32 = vmul.f32 %v3545_v26, %v3950_v22  ;;  %v1933_v13 = vcombine.low %v1914_v53, %v1930_v54  ;;  %v2097_v16 = vpack.c.bf16 %v1934_v7, %v1934_v7 }
 0x56f   : > { %v1676_v36 = vcombine.low %v1652_v21, %v1668_v50  ;;  %v1677_v37 = vcombine.high %v1652_v21, %v1668_v50  ;;  %v1692_v38 = vcombine.low %v1659_v27, %v1675_v29  ;;  %3357 = vmatmul.mubr.msk.bf16.vlgmr.msra.gmra.mrb[16].mxu0 %vm1059_vm3, %v1289_v31  ;;  %v1693_v40 = vcombine.high %v1659_v27, %v1675_v29 }
 0x570   : > { %3367 = vmatpush3.bf16.msra.mxu0 %v1439_v39  ;;  %v1288_v49 = vpack.c.bf16 %v1284_v32, %v1284_v32  ;;  %3368 = vmatprep.mubr.msk.bf16.mxu0 %vm3640_vm2, %v3639_v17  ;;  %v1287_v41 = vmul.f32 %v3547_v18, %v3954_v23  ;;  %v2102_v12 = vsel %vm1059_vm3, %v2094_v4, 0  ;;  %v2096_v26 = vpack.c.bf16 %v1933_v13, %v1933_v13 }
 0x571   : > { %v3549_v22 = vpop.eup %3548  ;;  %v1684_v44 = vrot.slane %v1676_v36, %v3823_v9  ;;  %v1691_v42 = vrot.slane %v1677_v37, %v3823_v9  ;;  %v1700_v47 = vrot.slane %v1692_v38, %v3823_v9  ;;  %3378 = vmatprep.subr.bf16.mxu0 %v3639_v17  ;;  %v1707_v51 = vrot.slane %v1693_v40, %v3823_v9 }
 0x572   : > { %3351 = vmatmul.mubr.msk.bf16.vlgmr.msra.gmra.mrb[4].mxu1 %vm1059_vm3, %v1288_v49  ;;  %v1286_v59 = vmul.f32 %v3549_v22, %v3960_v25  ;;  %v1291_v0 = vpack.c.bf16 %v1287_v41, %v1287_v41  ;;  %v2148_v25 = vsel %vm1059_vm3, %v2095_v48, 0  ;;  %v2240_v27 = vsel %vm1059_vm3, %v2097_v16, 0 }
 0x573   : > { %v1712_v55 = vcombine.low %v1684_v44, %v1691_v42  ;;  %v3225_v23 = vcombine.high %v1684_v44, %v1691_v42  ;;  %3361 = vmatpush3.bf16.msra.mxu1 %v1393_v52  ;;  %3362 = vmatprep.mubr.msk.bf16.mxu1 %vm3640_vm2, %v3639_v17  ;;  %v1728_v60 = vcombine.low %v1700_v47, %v1707_v51  ;;  %v2194_v31 = vsel %vm1059_vm3, %v2096_v26, 0 }
 0x574   : > { %v3226_v61 = vcombine.high %v1700_v47, %v1707_v51  ;;  %3372 = vmatprep.subr.bf16.mxu1 %v3639_v17  ;;  %v1290_v6 = vpack.c.bf16 %v1286_v59, %v1286_v59 }
 0x575   : > { %v1719_v62 = vrot.slane %v1712_v55, %v3820_v2  ;;  %v1727_v63 = vrot.slane %v3225_v23, %v3820_v2  ;;  %v1735_v1 = vrot.slane %v1728_v60, %v3820_v2 }
 0x576   : > { %v1743_v3 = vrot.slane %v3226_v61, %v3820_v2 }
 0x577   : > { %v1744_v45 = vcombine.low %v1719_v62, %v1727_v63  ;;  %3369 = vmatmul.mubr.msk.bf16.vlgmr.msra.gmra.mrb[20].mxu0 %vm1059_vm3, %v1291_v0  ;;  %v1745_v56 = vcombine.high %v1719_v62, %v1727_v63 }
 0x578   : > { %v1760_v5 = vcombine.low %v1735_v1, %v1743_v3  ;;  %3380 = vmatprep.mubr.msk.bf16.mxu0 %vm3640_vm2, %v3639_v17  ;;  %v1761_v10 = vcombine.high %v1735_v1, %v1743_v3 }
 0x579   : > { %3379 = vmatpush3.bf16.xpose.msra.mxu0 %v2148_v25  ;;  %v1752_v8 = vrot.slane %v1744_v45, %v3823_v9  ;;  %v1759_v24 = vrot.slane %v1745_v56, %v3823_v9 }
 0x57a   : > { %3363 = vmatmul.mubr.msk.bf16.vlgmr.msra.gmra.mrb[8].mxu1 %vm1059_vm3, %v1290_v6  ;;  %v1768_v11 = vrot.slane %v1760_v5, %v3823_v9  ;;  %3390 = vmatprep.subr.bf16.mxu0 %v3639_v17  ;;  %v1775_v57 = vrot.slane %v1761_v10, %v3823_v9 }
 0x57b   : > { %3374 = vmatprep.mubr.msk.bf16.mxu1 %vm3640_vm2, %v3639_v17 }
 0x57c   : > { %3373 = vmatpush3.bf16.xpose.msra.mxu1 %v2102_v12  ;;  %v1777_v15 = vcombine.high %v1752_v8, %v1768_v11  ;;  %v1776_v19 = vcombine.low %v1752_v8, %v1768_v11  ;;  %v1779_v29 = vcombine.high %v1759_v24, %v1775_v57  ;;  %v1778_v18 = vcombine.low %v1759_v24, %v1775_v57 }
 0x57d   : > { %3384 = vmatprep.subr.bf16.mxu1 %v3639_v17 }
 0x57e   : > { %v2091_v21 = vpack.c.bf16 %v1777_v15, %v1777_v15  ;;  %v2090_v50 = vpack.c.bf16 %v1776_v19, %v1776_v19  ;;  %v2093_v32 = vpack.c.bf16 %v1779_v29, %v1779_v29  ;;  %v2092_v14 = vpack.c.bf16 %v1778_v18, %v1778_v18 }
 0x580   : > { %3381 = vmatmul.mubr.msk.bf16.vlgmr.msra.gmra.mrb[24].mxu0 %vm1059_vm3, %v2091_v21 }
 0x581   : > { %3391 = vmatpush3.bf16.xpose.msra.mxu0 %v2240_v27  ;;  %3392 = vmatprep.mubr.msk.bf16.mxu0 %vm3640_vm2, %v3639_v17 }
 0x582   : > { %3402 = vmatprep.subr.bf16.mxu0 %v3639_v17 }
 0x583   : > { %3375 = vmatmul.mubr.msk.bf16.vlgmr.msra.gmra.mrb[12].mxu1 %vm1059_vm3, %v2090_v50 }
 0x584   : > { %3385 = vmatpush3.bf16.xpose.msra.mxu1 %v2194_v31  ;;  %3386 = vmatprep.mubr.msk.bf16.mxu1 %vm3640_vm2, %v3639_v17 }
 0x585   : > { %3396 = vmatprep.subr.bf16.mxu1 %v3639_v17 }
 0x588   : > { %3393 = vmatmul.mubr.msk.bf16.vlgmr.msra.gmra.mrb[28].mxu0 %vm1059_vm3, %v2093_v32 }
 0x589   : > { %3404 = vmatprep.mubr.msk.bf16.mxu0 %vm3640_vm2, %v3639_v17 }
 0x58b   : > { %3387 = vmatmul.mubr.msk.bf16.vlgmr.msra.gmra.mrb[16].mxu1 %vm1059_vm3, %v2092_v14 }
 0x58c   : > { %3398 = vmatprep.mubr.msk.bf16.mxu1 %vm3640_vm2, %v3639_v17 }
 0x642   : > { %v1383_v33 = vpop.f32.mrb[16].mxu0 }
 0x643   : > { %v3358_v35 = vpop.f32.mrb[17].mxu0 }
 0x644   : > { %v1386_v36 = vpop.f32.mrb[18].mxu0 }
 0x645   : > { %v1337_v37 = vpop.f32.mrb[4].mxu1  ;;  %v3359_v38 = vpop.f32.mrb[19].mxu0 }
 0x646   : > { %v3352_v39 = vpop.f32.mrb[5].mxu1 }
 0x647   : > { %v1340_v40 = vpop.f32.mrb[6].mxu1 }
 0x648   : > { %v3353_v49 = vpop.f32.mrb[7].mxu1 }
 0x64a   : > { %v1475_v46 = vpop.f32.mrb[20].mxu0 }
 0x64b   : > { %v1497_v22 = vcombine.low %v1383_v33, %v1475_v46  ;;  %v1498_v41 = vcombine.high %v1383_v33, %v1475_v46  ;;  %v3370_v44 = vpop.f32.mrb[21].mxu0 }
 0x64c   : > { %v1478_v42 = vpop.f32.mrb[22].mxu0 }
 0x64d   : > { %v1429_v47 = vpop.f32.mrb[8].mxu1  ;;  %v3371_v51 = vpop.f32.mrb[23].mxu0  ;;  %v1505_v23 = vrot.slane %v1497_v22, %v3820_v2  ;;  %v1512_v58 = vrot.slane %v1498_v41, %v3820_v2 }
 0x64e   : > { %v1481_v52 = vcombine.low %v1337_v37, %v1429_v47  ;;  %v1482_v53 = vcombine.high %v1337_v37, %v1429_v47  ;;  %v3364_v54 = vpop.f32.mrb[9].mxu1 }
 0x64f   : > { %v1432_v55 = vpop.f32.mrb[10].mxu1 }
 0x650   : > { %v1489_v59 = vrot.slane %v1481_v52, %v3820_v2  ;;  %v1496_v60 = vrot.slane %v1482_v53, %v3820_v2  ;;  %v3365_v61 = vpop.f32.mrb[11].mxu1 }
 0x652   : > { %v1513_v48 = vcombine.low %v1489_v59, %v1505_v23  ;;  %v1514_v62 = vcombine.high %v1489_v59, %v1505_v23  ;;  %v1529_v63 = vcombine.low %v1496_v60, %v1512_v58  ;;  %v1530_v0 = vcombine.high %v1496_v60, %v1512_v58  ;;  %v1937_v58 = vpop.permute.xlu1 %1936 }
 0x653   : > { %v2184_v1 = vpop.f32.mrb[24].mxu0 }
 0x654   : > { %v1521_v3 = vrot.slane %v1513_v48, %v3823_v9  ;;  %v1528_v45 = vrot.slane %v1514_v62, %v3823_v9  ;;  %v1537_v4 = vrot.slane %v1529_v63, %v3823_v9  ;;  %v1544_v5 = vrot.slane %v1530_v0, %v3823_v9  ;;  %v3382_v25 = vpop.f32.mrb[25].mxu0 }
 0x655   : > { %v2185_v6 = vadd.f32 %v2184_v1, %v3892_v43  ;;  %v2187_v7 = vpop.f32.mrb[26].mxu0 }
 0x656   : > { %v1549_v8 = vcombine.low %v1521_v3, %v1528_v45  ;;  %v3223_v56 = vcombine.high %v1521_v3, %v1528_v45  ;;  %v1565_v10 = vcombine.low %v1537_v4, %v1544_v5  ;;  %v3224_v11 = vcombine.high %v1537_v4, %v1544_v5  ;;  %v2138_v12 = vpop.f32.mrb[12].mxu1  ;;  %v3383_v13 = vpop.f32.mrb[27].mxu0 }
 0x657   : > { %v2139_v15 = vadd.f32 %v2138_v12, %v3892_v43  ;;  %v2285_v16 = vsel %vm1059_vm3, %v2185_v6, -inf  ;;  %v3376_v19 = vpop.f32.mrb[13].mxu1 }
 0x658   : > { %v1556_v21 = vrot.slane %v1549_v8, %v3820_v2  ;;  %v1564_v24 = vrot.slane %v3223_v56, %v3820_v2  ;;  %v1572_v57 = vrot.slane %v1565_v10, %v3820_v2  ;;  %v1580_v26 = vrot.slane %v3224_v11, %v3820_v2  ;;  %2286 = vmax.xlane.f32.xlu0 %v2285_v16  ;;  %v2141_v27 = vpop.f32.mrb[14].mxu1 }
 0x659   : > { %v3377_v50 = vpop.f32.mrb[15].mxu1  ;;  %v2282_v29 = vsel %vm1059_vm3, %v2139_v15, -inf }
 0x65a   : > { %2283 = vmax.xlane.f32.xlu1 %v2282_v29  ;;  %v1582_v31 = vcombine.high %v1556_v21, %v1564_v24  ;;  %v1598_v18 = vcombine.high %v1572_v57, %v1580_v26  ;;  %v1581_v32 = vcombine.low %v1556_v21, %v1564_v24  ;;  %v1597_v14 = vcombine.low %v1572_v57, %v1580_v26 }
 0x65b   : > { %v2276_v33 = vpop.f32.mrb[28].mxu0 }
 0x65c   : > { %v3394_v35 = vpop.f32.mrb[29].mxu0  ;;  %v4071_v36 = vrot.slane %v1582_v31, %v3823_v9  ;;  %v4074_v37 = vrot.slane %v1598_v18, %v3823_v9  ;;  %v4077_v38 = vrot.slane %v1581_v32, %v3823_v9  ;;  %v4080_v40 = vrot.slane %v1597_v14, %v3823_v9 }
 0x65d   : > { %v2279_v39 = vpop.f32.mrb[30].mxu0  ;;  %v2277_v53 = vadd.f32 %v2276_v33, %v3892_v43 }
 0x65e   : > { %v2230_v49 = vpop.f32.mrb[16].mxu1  ;;  %v3395_v46 = vpop.f32.mrb[31].mxu0  ;;  %v1615_v22 = vcombine.low %v4071_v36, %v4074_v37  ;;  %v1616_v41 = vcombine.high %v4071_v36, %v4074_v37  ;;  %v1613_v47 = vcombine.low %v4077_v38, %v4080_v40  ;;  %v1614_v51 = vcombine.high %v4077_v38, %v4080_v40  ;;  %v4199_v40 = vld [vmem:[%s3754_s17] sm:$0xff] }
 0x65f   : > { %v2231_v44 = vadd.f32 %v2230_v49, %v3892_v43  ;;  %v3388_v42 = vpop.f32.mrb[17].mxu1  ;;  %v2291_v23 = vsel %vm1059_vm3, %v2277_v53, -inf  ;;  %v2676_v38 = vsub.s32 4, %v3780_v20 }
 0x660   : > { %v2233_v52 = vpop.f32.mrb[18].mxu1 }
 0x661   : > { %v3389_v54 = vpop.f32.mrb[19].mxu1  ;;  %v2288_v55 = vsel %vm1059_vm3, %v2231_v44, -inf }
 0x662   : > { %2289 = vmax.xlane.f32.xlu0 %v2288_v55 }
 0x666   : > { %2292 = vmax.xlane.f32.xlu0 %v2291_v23 }
 0x66b   : > { %1940 = vrot.lane.b32.xlu1 %v3970_v28, %s3645_s26 }
 0x67c   : > { %1938 = vrot.lane.b32.xlu0 %v3970_v28, %s3644_s19 }
 0x6e5   : > { %v2287_v59 = vpop.xlane.xlu0 %2286 }
 0x6e6   : > { %v2295_v60 = vsub.f32 %v2185_v6, %v2287_v59 }
 0x6e7   : > { %v2284_v61 = vpop.xlane.xlu1 %2283 }
 0x6e8   : > { %v2300_v48 = vmul.f32 1.442695, %v2295_v60  ;;  %v2294_v62 = vsub.f32 %v2139_v15, %v2284_v61 }
 0x6ea   : > { %3550 = vpow2.f32 %v2300_v48  ;;  %v2298_v43 = vmul.f32 1.442695, %v2294_v62 }
 0x6eb   : > { %v1941_v25 = vpop.permute.xlu1 %1940 }
 0x6ec   : > { %3552 = vpow2.f32 %v2298_v43 }
 0x6ef   : > { %v2290_v45 = vpop.xlane.xlu0 %2289 }
 0x6f0   : > { %v2296_v6 = vsub.f32 %v2231_v44, %v2290_v45 }
 0x6f2   : > { %v2302_v7 = vmul.f32 1.442695, %v2296_v6 }
 0x6f3   : > { %v2293_v4 = vpop.xlane.xlu0 %2292 }
 0x6f4   : > { %v4098_v63 = vpop.eup %3550  ;;  %3554 = vpow2.f32 %v2302_v7  ;;  %v2297_v8 = vsub.f32 %v2277_v53, %v2293_v4 }
 0x6f5   : > { %v2309_v0 = vsel %vm1059_vm3, %v4098_v63, 0.0 }
 0x6f6   : > { %v4102_v1 = vpop.eup %3552  ;;  %2310 = vadd.xlane.f32.xlu0 %v2309_v0  ;;  %v2304_v56 = vmul.f32 1.442695, %v2297_v8 }
 0x6f7   : > { %v2306_v3 = vsel %vm1059_vm3, %v4102_v1, 0.0  ;;  %v1939_v5 = vpop.permute.xlu0 %1938 }
 0x6f8   : > { %2307 = vadd.xlane.f32.xlu1 %v2306_v3  ;;  %3556 = vpow2.f32 %v2304_v56 }
 0x6fe   : > { %v4111_v10 = vpop.eup %3554 }
 0x6ff   : > { %v2312_v11 = vsel %vm1059_vm3, %v4111_v10, 0.0 }
 0x702   : > { %v4115_v12 = vpop.eup %3556 }
 0x709   : > { %1944 = vrot.lane.b32.xlu1 %v1937_v58, %s3646_s27 }
 0x70c   : > { %1942 = vrot.lane.b32.xlu0 %v3970_v28, %s3646_s27  ;;  %v2315_v28 = vsel %vm1059_vm3, %v4115_v12, 0.0 }
 0x70d   : > { %1946 = vrot.lane.b32.xlu1 %v1939_v5, %s3646_s27 }
 0x711   : > { %1948 = vrot.lane.b32.xlu1 %v1941_v25, %s3646_s27 }
 0x72b   : > { %2313 = vadd.xlane.f32.xlu0 %v2312_v11 }
 0x735   : > { %2316 = vadd.xlane.f32.xlu1 %v2315_v28 }
 0x783   : > { %v2311_v15 = vpop.xlane.xlu0 %2310 }
 0x784   : > { %3558 = vrcp.f32 %v2311_v15 }
 0x785   : > { %v2308_v13 = vpop.xlane.xlu1 %2307 }
 0x786   : > { %3560 = vrcp.f32 %v2308_v13 }
 0x787   : > { %v1943_v21 = vpop.permute.xlu0 %1942 }
 0x789   : > { %v1945_v16 = vpop.permute.xlu1 %1944 }
 0x78d   : > { %v1947_v19 = vpop.permute.xlu1 %1946 }
 0x78e   : > { %v1954_v24 = vcombine.low %v1943_v21, %v1947_v19  ;;  %v1955_v57 = vcombine.high %v1943_v21, %v1947_v19  ;;  %v3559_v0 = vpop.eup %3558 }
 0x78f   : > { %v2323_v11 = vmul.f32 %v3559_v0, %v4098_v63 }
 0x790   : > { %v1962_v29 = vrot.slane %v1954_v24, %v3820_v2  ;;  %v1969_v31 = vrot.slane %v1955_v57, %v3820_v2  ;;  %v3561_v25 = vpop.eup %3560 }
 0x791   : > { %v1949_v26 = vpop.permute.xlu1 %1948  ;;  %v2322_v28 = vmul.f32 %v3561_v25, %v4102_v1 }
 0x792   : > { %v1970_v27 = vcombine.low %v1945_v16, %v1949_v26  ;;  %v1971_v50 = vcombine.high %v1945_v16, %v1949_v26  ;;  %v2327_v26 = vpack.c.bf16 %v2323_v11, %v2323_v11 }
 0x793   : > { %v2326_v57 = vpack.c.bf16 %v2322_v28, %v2322_v28 }
 0x794   : > { %v1978_v18 = vrot.slane %v1970_v27, %v3820_v2  ;;  %v1985_v32 = vrot.slane %v1971_v50, %v3820_v2 }
 0x796   : > { %v1986_v14 = vcombine.low %v1962_v29, %v1978_v18  ;;  %v1987_v33 = vcombine.high %v1962_v29, %v1978_v18  ;;  %v2002_v35 = vcombine.low %v1969_v31, %v1985_v32  ;;  %v2003_v39 = vcombine.high %v1969_v31, %v1985_v32 }
 0x798   : > { %v1994_v49 = vrot.slane %v1986_v14, %v3823_v9  ;;  %v2001_v46 = vrot.slane %v1987_v33, %v3823_v9  ;;  %v2010_v44 = vrot.slane %v2002_v35, %v3823_v9  ;;  %v2017_v42 = vrot.slane %v2003_v39, %v3823_v9 }
 0x79a   : > { %v2022_v52 = vcombine.low %v1994_v49, %v2001_v46  ;;  %v3229_v53 = vcombine.high %v1994_v49, %v2001_v46  ;;  %v2038_v54 = vcombine.low %v2010_v44, %v2017_v42  ;;  %v3230_v55 = vcombine.high %v2010_v44, %v2017_v42 }
 0x79c   : > { %v2029_v23 = vrot.slane %v2022_v52, %v3820_v2  ;;  %v2037_v58 = vrot.slane %v3229_v53, %v3820_v2  ;;  %v2045_v59 = vrot.slane %v2038_v54, %v3820_v2  ;;  %v2053_v60 = vrot.slane %v3230_v55, %v3820_v2 }
 0x79e   : > { %v2054_v61 = vcombine.low %v2029_v23, %v2037_v58  ;;  %v2070_v48 = vcombine.low %v2045_v59, %v2053_v60  ;;  %v2055_v62 = vcombine.high %v2029_v23, %v2037_v58  ;;  %v2071_v43 = vcombine.high %v2045_v59, %v2053_v60 }
 0x7a0   : > { %v2062_v3 = vrot.slane %v2054_v61, %v3823_v9  ;;  %v2078_v45 = vrot.slane %v2070_v48, %v3823_v9  ;;  %v2069_v4 = vrot.slane %v2055_v62, %v3823_v9  ;;  %v2085_v5 = vrot.slane %v2071_v43, %v3823_v9 }
 0x7a2   : > { %v2086_v6 = vcombine.low %v2062_v3, %v2078_v45  ;;  %v2087_v7 = vcombine.high %v2062_v3, %v2078_v45  ;;  %v2088_v8 = vcombine.low %v2069_v4, %v2085_v5  ;;  %v2089_v56 = vcombine.high %v2069_v4, %v2085_v5 }
 0x7a4   : > { %v2330_v13 = vpack.c.bf16 %v2086_v6, %v2086_v6  ;;  %v2331_v15 = vpack.c.bf16 %v2087_v7, %v2087_v7  ;;  %v2332_v21 = vpack.c.bf16 %v2088_v8, %v2088_v8  ;;  %v2333_v24 = vpack.c.bf16 %v2089_v56, %v2089_v56 }
 0x7a6   : > { %v2338_v16 = vsel %vm1299_vm4, %v2330_v13, 0  ;;  %v2384_v19 = vsel %vm1299_vm4, %v2331_v15, 0  ;;  %v2430_v63 = vsel %vm1299_vm4, %v2332_v21, 0  ;;  %v2476_v1 = vsel %vm1299_vm4, %v2333_v24, 0  ;;  %v3518_v21 = vld [vmem:[%s3739_s22] sm:$0xff]  }
 0x7a7   : > { %3397 = vmatpush3.bf16.msra.mxu1 %v2338_v16  ;;  %3403 = vmatpush3.bf16.msra.mxu0 %v2384_v19 }
 0x7a8   : > { %3408 = vmatprep.subr.bf16.mxu1 %v3639_v17  ;;  %3414 = vmatprep.subr.bf16.mxu0 %v3639_v17 }
 0x7aa   : > { %3399 = vmatmul.mubr.msk.bf16.vlgmr.msra.gmra.mrb[20].mxu1 %vm1059_vm3, %v2326_v57  ;;  %3405 = vmatmul.mubr.msk.bf16.vlgmr.msra.gmra.mrb[32].mxu0 %vm1059_vm3, %v2327_v26 }
 0x7ab   : > { %3409 = vmatpush3.bf16.msra.mxu1 %v2430_v63  ;;  %3415 = vmatpush3.bf16.msra.mxu0 %v2476_v1 }
 0x7ac   : > { %3410 = vmatprep.mubr.msk.bf16.mxu1 %vm3640_vm2, %v3639_v17  ;;  %3416 = vmatprep.mubr.msk.bf16.mxu0 %vm3640_vm2, %v3639_v17 }
 0x7ad   : > { %3420 = vmatprep.subr.bf16.mxu1 %v3639_v17  ;;  %3428 = vmatprep.subr.bf16.mxu0 %v3639_v17 }
 0x7b8   : > { %v2314_v27 = vpop.xlane.xlu0 %2313 }
 0x7b9   : > { %3562 = vrcp.f32 %v2314_v27 }
 0x7c2   : > { %v2317_v50 = vpop.xlane.xlu1 %2316 }
 0x7c3   : > { %v3563_v29 = vpop.eup %3562  ;;  %3564 = vrcp.f32 %v2317_v50 }
 0x7c4   : > { %v2324_v31 = vmul.f32 %v3563_v29, %v4111_v10 }
 0x7c6   : > { %v2328_v18 = vpack.c.bf16 %v2324_v31, %v2324_v31 }
 0x7c8   : > { %3411 = vmatmul.mubr.msk.bf16.vlgmr.msra.gmra.mrb[24].mxu1 %vm1059_vm3, %v2328_v18 }
 0x7c9   : > { %3424 = vmatprep.mubr.msk.bf16.mxu1 %vm3640_vm2, %v3639_v17  ;;  %3421 = vmatpush3.bf16.msra.mxu1 %v3518_v21 }
 0x7ca   : > { %3422 = vmatprep.subr.bf16.mxu1 %v3639_v17 }
 0x7cd   : > { %v3565_v32 = vpop.eup %3564 }
 0x7ce   : > { %v2325_v14 = vmul.f32 %v3565_v32, %v4115_v12 }
 0x7d0   : > { %v2329_v33 = vpack.c.bf16 %v2325_v14, %v2325_v14 }
 0x7d2   : > { %3417 = vmatmul.mubr.msk.bf16.vlgmr.msra.gmra.mrb[36].mxu0 %vm1059_vm3, %v2329_v33  ;;  %v3519_v33 = vld [vmem:[%s3739_s22 + $0x8] sm:$0xff]   ;;  %s3649_s22 = smov 16  }
 0x7d3   : > { %3432 = vmatprep.mubr.msk.bf16.mxu0 %vm3640_vm2, %v3639_v17  ;;  %3423 = vmatpush3.bf16.msra.mxu1 %v3519_v33 }
 0x7d4   : > { %3436 = vmatprep.subr.bf16.mxu1 %v3639_v17 }
 0x87d   : > { %v2374_v35 = vpop.f32.mrb[20].mxu1  ;;  %v2420_v39 = vpop.f32.mrb[32].mxu0 }
 0x87e   : > { %v3400_v49 = vpop.f32.mrb[21].mxu1  ;;  %v3406_v46 = vpop.f32.mrb[33].mxu0 }
 0x87f   : > { %v2377_v10 = vpop.f32.mrb[22].mxu1  ;;  %v2423_v44 = vpop.f32.mrb[34].mxu0 }
 0x880   : > { %v3401_v42 = vpop.f32.mrb[23].mxu1  ;;  %v3407_v52 = vpop.f32.mrb[35].mxu0 }
 0x89b   : > { %v2466_v53 = vpop.f32.mrb[24].mxu1 }
 0x89c   : > { %v2518_v54 = vcombine.low %v2374_v35, %v2466_v53  ;;  %v2519_v55 = vcombine.high %v2374_v35, %v2466_v53  ;;  %v3412_v23 = vpop.f32.mrb[25].mxu1 }
 0x89d   : > { %v2469_v58 = vpop.f32.mrb[26].mxu1 }
 0x89e   : > { %v3413_v12 = vpop.f32.mrb[27].mxu1  ;;  %v2526_v43 = vrot.slane %v2518_v54, %v3820_v2  ;;  %v2533_v0 = vrot.slane %v2519_v55, %v3820_v2 }
 0x8a5   : > { %v2512_v59 = vpop.f32.mrb[36].mxu0 }
 0x8a6   : > { %v2534_v60 = vcombine.low %v2420_v39, %v2512_v59  ;;  %v2535_v61 = vcombine.high %v2420_v39, %v2512_v59  ;;  %v3418_v48 = vpop.f32.mrb[37].mxu0 }
 0x8a7   : > { %v2515_v62 = vpop.f32.mrb[38].mxu0 }
 0x8a8   : > { %v2542_v3 = vrot.slane %v2534_v60, %v3820_v2  ;;  %v2549_v45 = vrot.slane %v2535_v61, %v3820_v2  ;;  %v3419_v4 = vpop.f32.mrb[39].mxu0 }
 0x8aa   : > { %v2550_v5 = vcombine.low %v2526_v43, %v2542_v3  ;;  %v2551_v25 = vcombine.high %v2526_v43, %v2542_v3  ;;  %v2566_v6 = vcombine.low %v2533_v0, %v2549_v45  ;;  %v2567_v7 = vcombine.high %v2533_v0, %v2549_v45  ;;  %v3579_v0 = vld [vmem:[#allocation2] sm:$0xff] }
 0x8ac   : > { %v2558_v8 = vrot.slane %v2550_v5, %v3823_v9  ;;  %v2565_v56 = vrot.slane %v2551_v25, %v3823_v9  ;;  %v2574_v11 = vrot.slane %v2566_v6, %v3823_v9  ;;  %v2581_v28 = vrot.slane %v2567_v7, %v3823_v9  ;;  %v3580_v5 = vld [vmem:[#allocation2 + $0x8] sm:$0xff] }
 0x8ae   : > { %v2586_v13 = vcombine.low %v2558_v8, %v2565_v56  ;;  %v3239_v15 = vcombine.high %v2558_v8, %v2565_v56  ;;  %v2602_v16 = vcombine.low %v2574_v11, %v2581_v28  ;;  %v3240_v19 = vcombine.high %v2574_v11, %v2581_v28 }
 0x8b0   : > { %v2593_v24 = vrot.slane %v2586_v13, %v3820_v2  ;;  %v2601_v57 = vrot.slane %v3239_v15, %v3820_v2  ;;  %v2609_v26 = vrot.slane %v2602_v16, %v3820_v2  ;;  %v2617_v63 = vrot.slane %v3240_v19, %v3820_v2 }
 0x8b2   : > { %v2619_v1 = vcombine.high %v2593_v24, %v2601_v57  ;;  %v2635_v27 = vcombine.high %v2609_v26, %v2617_v63  ;;  %v2618_v50 = vcombine.low %v2593_v24, %v2601_v57  ;;  %v2634_v29 = vcombine.low %v2609_v26, %v2617_v63  ;;  %v3520_v57 = vld [vmem:[%s3744_s25] sm:$0xff]   ;;  %v3521_v26 = vld [vmem:[%s3744_s25 + $0x8] sm:$0xff]  }
 0x8b3   : > { %3429 = vmatpush3.bf16.msra.mxu0 %v3520_v57 }
 0x8b4   : > { %v2633_v31 = vrot.slane %v2619_v1, %v3823_v9  ;;  %v2649_v18 = vrot.slane %v2635_v27, %v3823_v9  ;;  %v2626_v32 = vrot.slane %v2618_v50, %v3823_v9  ;;  %v2642_v14 = vrot.slane %v2634_v29, %v3823_v9  ;;  %3430 = vmatprep.subr.bf16.mxu0 %v3639_v17 }
 0x8b6   : > { %v2652_v35 = vcombine.low %v2633_v31, %v2649_v18  ;;  %v2651_v39 = vcombine.high %v2626_v32, %v2642_v14  ;;  %v2650_v49 = vcombine.low %v2626_v32, %v2642_v14  ;;  %v2653_v2 = vcombine.high %v2633_v31, %v2649_v18 }
 0x8b7   : > { %3431 = vmatpush3.bf16.msra.mxu0 %v3521_v26  ;;  %v2764_v18 = vsub.s32 2, %v3780_v20 }
 0x8b8   : > { %v3506_v46 = vpack.i.bf16 %v2652_v35, %v1615_v22  ;;  %v3501_v10 = vpack.i.bf16 %v2651_v39, %v1614_v51  ;;  %v3511_v9 = vpack.i.bf16 %v2653_v2, %v1616_v41  ;;  %v2770_v35 = vsub.s32 3, %v3780_v20 }
 0x8b9   : > { %v2765_v14 = vrot.slane %v4199_v40, %v2764_v18 }
 0x8ba   : > { %3507 = vrot.lane.b32.xlu1 %v3506_v46, %s3649_s22  ;;  %3502 = vrot.lane.b32.xlu0 %v3501_v10, %s3650_s21  ;;  %v2771_v46 = vrot.slane %v4199_v40, %v2770_v35 }
 0x8be   : > { %3512 = vrot.lane.b32.xlu0 %v3511_v9, %s3651_s23 }
 0x92c   : > { %v3508_v44 = vpop.permute.xlu1 %3507  ;;  %v3503_v42 = vpop.permute.xlu0 %3502 }
 0x92d   : > { %v3505_v52 = vunpack.i.h.bf16 %v3503_v42  ;;  %v3504_v53 = vunpack.i.l.bf16 %v3503_v42  ;;  %v3510_v22 = vunpack.i.h.bf16 %v3508_v44  ;;  %v3509_v54 = vunpack.i.l.bf16 %v3508_v44 }
 0x92f   : > { %v1629_v36 = vsel %vm1059_vm3, %v1613_v47, %v3504_v53  ;;  %v2666_v37 = vsel %vm1059_vm3, %v2650_v49, %v3505_v52  ;;  %v2677_v47 = vrot.slane %v4199_v40, %v2676_v38  ;;  %v3522_v52 = vld [vmem:[%s3749_s28] sm:$0xff]   ;;  %v3523_v53 = vld [vmem:[%s3749_s28 + $0x8] sm:$0xff]  }
 0x930   : > { %v3513_v41 = vpop.permute.xlu0 %3512  ;;  %v1631_v23 = vsel %vm1630_vm5, %v1629_v36, %v3509_v54  ;;  %v2667_v58 = vsel %vm1630_vm5, %v2666_v37, %v3510_v22  ;;  %v3524_v22 = vld [vmem:[%s3749_s28 + $0x10] sm:$0xff]   ;;  %v3525_v54 = vld [vmem:[%s3749_s28 + $0x18] sm:$0xff]   ;;  %v3526_v36 = vld [vmem:[%s3749_s28 + $0x20] sm:$0xff]  }
 0x931   : > { %v3515_v51 = vunpack.i.h.bf16 %v3513_v41  ;;  %v3514_v55 = vunpack.i.l.bf16 %v3513_v41  ;;  %v3527_v37 = vld [vmem:[%s3749_s28 + $0x28] sm:$0xff]   ;;  %v3528_v41 = vld [vmem:[%s3749_s28 + $0x30] sm:$0xff]  }
 0x933   : > { %v1633_v12 = vsel %vm1632_vm6, %v1631_v23, %v3514_v55  ;;  %v2668_v59 = vsel %vm1632_vm6, %v2667_v58, %v3515_v51  ;;  %v3529_v51 = vld [vmem:[%s3749_s28 + $0x38] sm:$0xff]   ;;  %v3244_v55 = vld [vmem:[%s451_s20] ss:$0 sm:$0xff] }
 0x934   : > { %v2669_v60 = vpack.c.bf16 %v2668_v59, %v1633_v12 }
 0x936   : > { %3425 = vmatmul.mubr.msk.bf16.vlgmr.msra.gmra.mrb[28].mxu1 %vm468_vm1, %v2669_v60 }
 0x937   : > { %3452 = vmatprep.mubr.msk.bf16.mxu1 %vm3640_vm2, %v3639_v17  ;;  %3437 = vmatpush3.bf16.msra.mxu1 %v3522_v52 }
 0x938   : > { %3438 = vmatprep.subr.bf16.mxu1 %v3639_v17 }
 0x93b   : > { %3439 = vmatpush3.bf16.msra.mxu1 %v3523_v53 }
 0x93c   : > { %3440 = vmatprep.subr.bf16.mxu1 %v3639_v17 }
 0x93f   : > { %3441 = vmatpush3.bf16.msra.mxu1 %v3524_v22 }
 0x940   : > { %3442 = vmatprep.subr.bf16.mxu1 %v3639_v17 }
 0x943   : > { %3443 = vmatpush3.bf16.msra.mxu1 %v3525_v54 }
 0x944   : > { %3444 = vmatprep.subr.bf16.mxu1 %v3639_v17 }
 0x947   : > { %3445 = vmatpush3.bf16.msra.mxu1 %v3526_v36 }
 0x948   : > { %3446 = vmatprep.subr.bf16.mxu1 %v3639_v17 }
 0x94b   : > { %3447 = vmatpush3.bf16.msra.mxu1 %v3527_v37 }
 0x94c   : > { %3448 = vmatprep.subr.bf16.mxu1 %v3639_v17 }
 0x94f   : > { %3449 = vmatpush3.bf16.msra.mxu1 %v3528_v41 }
 0x950   : > { %3450 = vmatprep.subr.bf16.mxu1 %v3639_v17 }
 0x953   : > { %3451 = vmatpush3.bf16.msra.mxu1 %v3529_v51 }
 0xa09   : > { %v2727_v61 = vpop.f32.mrb[28].mxu1 }
 0xa0a   : > { %v2728_v48 = vadd.f32 %v2727_v61, %v2677_v47  ;;  %v3426_v62 = vpop.f32.mrb[29].mxu1 }
 0xa0b   : > { %v2730_v43 = vpop.f32.mrb[30].mxu1 }
 0xa0c   : > { %v4202_v3 = vadd.f32 %v3579_v0, %v2728_v48  ;;  %v2731_v45 = vadd.f32 %v2730_v43, %v2677_v47  ;;  %v3427_v4 = vpop.f32.mrb[31].mxu1 }
 0xa0e   : > { %v4204_v25 = vadd.f32 %v3580_v5, %v2731_v45  ;;  %v2736_v6 = vsel %vm468_vm1, %v4202_v3, 0.0 }
 0xa0f   : > { %2737 = vadd.xlane.f32.xlu1 %v2736_v6 }
 0xa10   : > { %v2739_v7 = vsel %vm468_vm1, %v4204_v25, 0.0 }
 0xa11   : > { %2740 = vadd.xlane.f32.xlu0 %v2739_v7 }
 0xa9c   : > { %v2738_v8 = vpop.xlane.xlu1 %2737 }
 0xa9d   : > { %v2742_v56 = vmul.f32 0.03125, %v2738_v8 }
 0xa9e   : > { %v2741_v11 = vpop.xlane.xlu0 %2740 }
 0xa9f   : > { %v2744_v28 = vsub.f32 %v4202_v3, %v2742_v56  ;;  %v2743_v13 = vmul.f32 0.03125, %v2741_v11 }
 0xaa1   : > { %v2745_v15 = vsub.f32 %v4204_v25, %v2743_v13  ;;  %v2746_v16 = vmul.f32 %v2744_v28, %v2744_v28 }
 0xaa3   : > { %v2748_v19 = vsel %vm468_vm1, %v2746_v16, 0.0  ;;  %v2747_v21 = vmul.f32 %v2745_v15, %v2745_v15 }
 0xaa4   : > { %2749 = vadd.xlane.f32.xlu0 %v2748_v19 }
 0xaa5   : > { %v2751_v24 = vsel %vm468_vm1, %v2747_v21, 0.0 }
 0xaa8   : > { %2752 = vadd.xlane.f32.xlu0 %v2751_v24 }
 0xb31   : > { %v2750_v63 = vpop.xlane.xlu0 %2749 }
 0xb32   : > { %v2754_v1 = vmul.f32 0.03125, %v2750_v63 }
 0xb34   : > { %v2756_v27 = vadd.f32 1e-05, %v2754_v1 }
 0xb35   : > { %v2753_v50 = vpop.xlane.xlu0 %2752 }
 0xb36   : > { %3566 = vrsqrt.f32 %v2756_v27  ;;  %v2755_v29 = vmul.f32 0.03125, %v2753_v50 }
 0xb38   : > { %v2757_v31 = vadd.f32 1e-05, %v2755_v29 }
 0xb3a   : > { %3568 = vrsqrt.f32 %v2757_v31 }
 0xb40   : > { %v3567_v32 = vpop.eup %3566 }
 0xb41   : > { %v2760_v33 = vmul.f32 %v3567_v32, %v2744_v28 }
 0xb43   : > { %v2766_v49 = vmul.f32 %v2765_v14, %v2760_v33 }
 0xb44   : > { %v3569_v39 = vpop.eup %3568 }
 0xb45   : > { %v2761_v2 = vmul.f32 %v3569_v39, %v2745_v15  ;;  %v2772_v9 = vadd.f32 %v2771_v46, %v2766_v49 }
 0xb47   : > { %v2767_v10 = vmul.f32 %v2765_v14, %v2761_v2 }
 0xb49   : > { %v2773_v44 = vadd.f32 %v2771_v46, %v2767_v10 }
 0xb4b   : > { %v2774_v42 = vpack.c.bf16 %v2773_v44, %v2772_v9 }
 0xb4d   : > { %3433 = vmatmul.mubr.msk.bf16.vlgmr.msra.gmra.mrb[40].mxu0 %vm468_vm1, %v2774_v42 }
 0xc20   : > { %v2835_v23 = vpop.f32.mrb[40].mxu0 }
 0xc21   : > { %v2836_v58 = vadd.f32 %v3244_v55, %v2835_v23  ;;  %v3434_v12 = vpop.f32.mrb[41].mxu0 }
 0xc22   : > { %v2838_v59 = vpop.f32.mrb[42].mxu0 }
 0xc23   : > { %v2844_v60 = vmul.f32 0.70710677, %v2836_v58  ;;  %v2839_v38 = vadd.f32 %v3244_v55, %v2838_v59  ;;  %v3435_v47 = vpop.f32.mrb[43].mxu0  ;;  %v2842_v22 = vmul.f32 0.5, %v2836_v58  ;;  %v2915_v55 = vsub.s32 5, %v3780_v20 }
 0xc25   : > { %v2846_v61 = vand.u32 2147483647, %v2844_v60  ;;  %v2845_v48 = vmul.f32 0.70710677, %v2839_v38  ;;  %vm2886_vm7 = vcmp.ge.f32.partialorder %v2844_v60, 0.0  ;;  %v2843_v54 = vmul.f32 0.5, %v2839_v38 }
 0xc26   : > { %v2916_v23 = vrot.slane %v4199_v40, %v2915_v55 }
 0xc27   : > { %v2848_v62 = vmul.f32 0.3275911, %v2846_v61  ;;  %v2847_v43 = vand.u32 2147483647, %v2845_v48  ;;  %v2874_v4 = vsub.f32 0.0, %v2846_v61  ;;  %vm2887_vm8 = vcmp.ge.f32.partialorder %v2845_v48, 0.0 }
 0xc29   : > { %v2850_v0 = vadd.f32 1.0, %v2848_v62  ;;  %v2849_v17 = vmul.f32 0.3275911, %v2847_v43  ;;  %v2875_v5 = vsub.f32 0.0, %v2847_v43  ;;  %v2876_v7 = vmul.f32 %v2874_v4, %v2846_v61 }
 0xc2b   : > { %3570 = vrcp.f32 %v2850_v0  ;;  %v2851_v45 = vadd.f32 1.0, %v2849_v17  ;;  %v2877_v28 = vmul.f32 %v2875_v5, %v2847_v43  ;;  %v2878_v13 = vmul.f32 1.442695, %v2876_v7 }
 0xc2d   : > { %3572 = vrcp.f32 %v2851_v45  ;;  %v2880_v24 = vmul.f32 1.442695, %v2877_v28 }
 0xc2e   : > { %3574 = vpow2.f32 %v2878_v13 }
 0xc2f   : > { %3576 = vpow2.f32 %v2880_v24 }
 0xc35   : > { %v3571_v6 = vpop.eup %3570 }
 0xc36   : > { %v2856_v8 = vmul.f32 1.0614054, %v3571_v6 }
 0xc37   : > { %v3573_v56 = vpop.eup %3572 }
 0xc38   : > { %v2858_v11 = vadd.f32 -1.4531521, %v2856_v8  ;;  %v2857_v15 = vmul.f32 1.0614054, %v3573_v56  ;;  %v3575_v14 = vpop.eup %3574 }
 0xc39   : > { %v3577_v49 = vpop.eup %3576 }
 0xc3a   : > { %v2860_v16 = vmul.f32 %v3571_v6, %v2858_v11  ;;  %v2859_v19 = vadd.f32 -1.4531521, %v2857_v15 }
 0xc3c   : > { %v2862_v21 = vadd.f32 1.4214138, %v2860_v16  ;;  %v2861_v57 = vmul.f32 %v3573_v56, %v2859_v19  ;;  %v3014_v16 = vld [vmem:[%s4308_s8] sm:$0x3] (!%p3256_p6) }
 0xc3d   : > { %v3044_v19 = vrot.slane (!%p3256_p6), %v3014_v16, %v498_v30 }
 0xc3e   : > { %v2864_v26 = vmul.f32 %v3571_v6, %v2862_v21  ;;  %v2863_v63 = vadd.f32 1.4214138, %v2861_v57  ;;  %v3050_v57 = vrot.slane (!%p3256_p6), %v3014_v16, %v504_v34 }
 0xc40   : > { %v2866_v1 = vadd.f32 -0.28449672, %v2864_v26  ;;  %v2865_v27 = vmul.f32 %v3573_v56, %v2863_v63 }
 0xc42   : > { %v2868_v50 = vmul.f32 %v3571_v6, %v2866_v1  ;;  %v2867_v29 = vadd.f32 -0.28449672, %v2865_v27 }
 0xc44   : > { %v2870_v31 = vadd.f32 0.2548296, %v2868_v50  ;;  %v2869_v18 = vmul.f32 %v3573_v56, %v2867_v29 }
 0xc46   : > { %v2872_v32 = vmul.f32 %v3571_v6, %v2870_v31  ;;  %v2871_v33 = vadd.f32 0.2548296, %v2869_v18 }
 0xc48   : > { %v2882_v35 = vmul.f32 %v3575_v14, %v2872_v32  ;;  %v2873_v39 = vmul.f32 %v3573_v56, %v2871_v33 }
 0xc4a   : > { %v2884_v2 = vsub.f32 1.0, %v2882_v35  ;;  %v2883_v46 = vmul.f32 %v3577_v49, %v2873_v39 }
 0xc4c   : > { %v2888_v10 = vsub.f32 0.0, %v2884_v2  ;;  %v2885_v9 = vsub.f32 1.0, %v2883_v46 }
 0xc4e   : > { %v2890_v44 = vsel %vm2886_vm7, %v2884_v2, %v2888_v10  ;;  %v2889_v42 = vsub.f32 0.0, %v2885_v9 }
 0xc4f   : > { %v2892_v52 = vadd.f32 1.0, %v2890_v44 }
 0xc50   : > { %v2891_v53 = vsel %vm2887_vm8, %v2885_v9, %v2889_v42 }
 0xc51   : > { %v2893_v36 = vadd.f32 1.0, %v2891_v53  ;;  %v2894_v37 = vmul.f32 %v2892_v52, %v2842_v22 }
 0xc53   : > { %v2895_v41 = vmul.f32 %v2893_v36, %v2843_v54 }
 0xc55   : > { %v2896_v51 = vpack.c.bf16 %v2895_v41, %v2894_v37 }
 0xc57   : > { %3453 = vmatmul.mubr.bf16.vlgmr.msra.gmra.mrb[32].mxu1 %v2896_v51 }
 0xd2a   : > { %v2999_v12 = vpop.f32.mrb[32].mxu1 }
 0xd2b   : > { %v3000_v59 = vadd.f32 %v2999_v12, %v2916_v23  ;;  %v3454_v60 = vpop.f32.mrb[33].mxu1  ;;  %3013 = sbr.rel (%p3256_p6) target bundleno = 3693 (0xe6d), region = 64 }
 0xd2c   : > { %v3002_v47 = vpop.f32.mrb[34].mxu1 }
 0xd2d   : > { %v3006_v61 = vadd.f32 %v3000_v59, %v4202_v3  ;;  %v3003_v62 = vadd.f32 %v3002_v47, %v2916_v23  ;;  %v3455_v48 = vpop.f32.mrb[35].mxu1 }
 0xd2f   : > { %3008 = vst.msk [vmem:[#allocation2] sm:$0xff] %vm468_vm1, %v3006_v61  ;;  %v3007_v58 = vadd.f32 %v3003_v62, %v4204_v25  ;;  %v3015_v38 = vsel (!%p3256_p6), %vm468_vm1, %v3006_v61, 0.0 }
 0xd30   : > { %3016 = vadd.xlane.f32.xlu0 (!%p3256_p6), %v3015_v38 }
 0xd31   : > { %3009 = vst.msk [vmem:[#allocation2 + $0x8] sm:$0xff] %vm468_vm1, %v3007_v58  ;;  %v3018_v40 = vsel (!%p3256_p6), %vm468_vm1, %v3007_v58, 0.0 }
 0xd34   : > { %3019 = vadd.xlane.f32.xlu0 %v3018_v40 }
 0xdbd   : > { %v3017_v43 = vpop.xlane.xlu0 %3016 }
 0xdbe   : > { %v3021_v0 = vmul.f32 0.03125, %v3017_v43 }
 0xdc0   : > { %v3023_v3 = vsub.f32 %v3006_v61, %v3021_v0 }
 0xdc1   : > { %v3020_v17 = vpop.xlane.xlu0 %3019 }
 0xdc2   : > { %v3022_v45 = vmul.f32 0.03125, %v3020_v17  ;;  %v3025_v4 = vmul.f32 %v3023_v3, %v3023_v3 }
 0xdc4   : > { %v3024_v5 = vsub.f32 %v3007_v58, %v3022_v45  ;;  %v3027_v25 = vsel %vm468_vm1, %v3025_v4, 0.0 }
 0xdc5   : > { %3028 = vadd.xlane.f32.xlu1 %v3027_v25 }
 0xdc6   : > { %v3026_v6 = vmul.f32 %v3024_v5, %v3024_v5 }
 0xdc8   : > { %v3030_v7 = vsel %vm468_vm1, %v3026_v6, 0.0 }
 0xdc9   : > { %3031 = vadd.xlane.f32.xlu1 %v3030_v7 }
 0xe52   : > { %v3029_v8 = vpop.xlane.xlu1 %3028 }
 0xe53   : > { %v3033_v56 = vmul.f32 0.03125, %v3029_v8 }
 0xe55   : > { %v3035_v11 = vadd.f32 1e-05, %v3033_v56 }
 0xe56   : > { %v3032_v28 = vpop.xlane.xlu1 %3031 }
 0xe57   : > { %3581 = vrsqrt.f32 %v3035_v11  ;;  %v3034_v13 = vmul.f32 0.03125, %v3032_v28 }
 0xe59   : > { %v3036_v15 = vadd.f32 1e-05, %v3034_v13 }
 0xe5b   : > { %3583 = vrsqrt.f32 %v3036_v15 }
 0xe61   : > { %v3582_v21 = vpop.eup %3581 }
 0xe62   : > { %v3039_v24 = vmul.f32 %v3582_v21, %v3023_v3 }
 0xe64   : > { %v3045_v26 = vmul.f32 %v3044_v19, %v3039_v24 }
 0xe65   : > { %v3584_v63 = vpop.eup %3583 }
 0xe66   : > { %v3051_v1 = vadd.f32 %v3050_v57, %v3045_v26  ;;  %v3040_v27 = vmul.f32 %v3584_v63, %v3024_v5 }
 0xe68   : > { %3053 = vst.msk [vmem:[#allocation3] sm:$0xff] %vm468_vm1, %v3051_v1  ;;  %v3046_v50 = vmul.f32 %v3044_v19, %v3040_v27 }
 0xe6a   : > { %v3052_v29 = vadd.f32 %v3050_v57, %v3046_v50 }
 0xe6c   : > { %3054 = vst.msk [vmem:[#allocation3 + $0x8] sm:$0xff] %vm468_vm1, %v3052_v29 }
 0xe6d PF: > { %s4312_s28 = sadd.s32 4294967295, %s3637_s11   ;;  %s3652_s24 = smov [#allocation3]  }
 0xe6e   : > { %p4264_p7 = scmp.eq.s32.totalorder %s4312_s28, 1  ;;  %s3064_s16 = sshll.u32 %s3652_s24, 4  ;;  %s3065_s16 = int_to_ptr.vmem [resolvable:$true] %s3064_s16 }
 0xe6f   : > { %s3585_s2 = scalar_lea.vmem %s3065_s16, 256  ;;  %p3592_p11 = scmp.lt.s32.totalorder %s3065_s16, %s3065_s16 }
 0xe70   : > { %p3586_p8 = scmp.ne.s32.totalorder %s3065_s16, %s3585_s2  ;;  %p3593_p12 = scmp.lt.s32.totalorder %s3585_s2, %s3585_s2 }
 0xe72   : > { %p3587_p9 = pnand %p3586_p8, %p4264_p7  ;;  %p3594_p13 = por %p3593_p12, %p3592_p11 }
 0xe74   : > { %p3588_p10 = pneg %p3587_p9 }
 0xe76   : > { %p3595_p0 = pnand %p3594_p13, %p3588_p10 }
 0xe78   : > { %3598 = shalt.err (!%p3595_p0)
}
 0xe79   : > { %s3599_s19 = scalar_lea.hbm %s4309_s9, 256 }
 0xe7a   : > { %p3600_p1 = scmp.ne.s32.totalorder %s4309_s9, %s3599_s19  ;;  %p3605_p4 = scmp.lt.u32.totalorder %s3599_s19, %s4309_s9 }
 0xe7c   : > { %p3601_p2 = pnand %p3600_p1, %p4264_p7 }
 0xe7e   : > { %p3602_p3 = pneg %p3601_p2 }
 0xe80   : > { %p3607_p5 = pnand %p3605_p4, %p3602_p3 }
 0xe82   : > { %3610 = shalt.err (!%p3607_p5)
}
 0xe83   : > { %s3653_s22 = smov 128  }
 0xe84   : > { %3457 = dma.vmem_to_hbm [thread:$0]  (%p4264_p7), %s3065_s16, 256, %s4309_s9, [#allocation4], %s3653_s22, %s3653_s22, %s3650_s21  }
 0xe85   : > { %3624 = dma.done.wait (%p4264_p7), [#allocation4], 256  }
 0xe86   : > { %3626 = vsyncadd (%p4264_p7), [#allocation4], 4294967040 }
 0xe87 PF: > { %s20_s11 = sadd.s32 1, %s3637_s11   ;;  %s4314_s30 = smov %s3633_s10 }
 0xe88   : > { %p17_p6 = scmp.ge.s32.totalorder %s20_s11, 4   ;;  %s4315_s10 = smov %s4317_s13 }
 0xe8a   :  { %19 = sbr.rel (!%p17_p6) target bundleno = 4 (0x4), region = 110 }
 0xe91   :  { %3080 = vsyncpa [#allocation4], 1 }
 0xe92   :  { %3082 = vsyncpa [#allocation4 + $0x1], 1 }

</bundles_post_ra>
